<compile_context>
chip_gen: v7x
topology: tpu7x:2x2x1
jax: 0.10.0
libtpu: 0.0.40
codegen_flags: <defaults>
</compile_context>

<pallas_src>
import functools

import jax
import jax.numpy as jnp
from jax.experimental import pallas as pl
from jax.experimental.pallas import tpu as pltpu


def _swap01(x):
    """[A, B, C] -> [B, A, C] inside the kernel (TPU-layout-aware when possible)."""
    try:
        return pltpu.einshape("abc->bac", x)
    except Exception:  # API-surface fallback; same primitive family either way.
        return jnp.swapaxes(x, 0, 1)


def _temporal_attn_kernel(x_ref, ste_ref, wx_ref, wste_ref, bqkv_ref,
                          w15_ref, b15_ref, w16_ref, b16_ref, o_ref,
                          *, T, Nb, K, d, matmul_dtype):
    """One grid step: one batch element x a block of Nb nodes (Nb*T rows)."""
    D = K * d
    rows = Nb * T
    f32 = jnp.float32

    # [T, Nb, D] -> [Nb, T, D] -> [Nb*T, D]: node-major rows so the attention
    # can batch over nodes with batch-leading einsums.
    x = _swap01(x_ref[0]).reshape(rows, D).astype(matmul_dtype)
    ste = _swap01(ste_ref[0]).reshape(rows, D).astype(matmul_dtype)

    # Fused Q/K/V projection; 1/sqrt(d) is folded into the Q columns (relu
    # commutes with a positive scale), so no separate score scaling is needed.
    qkv = jnp.dot(x, wx_ref[...], preferred_element_type=f32)
    qkv = qkv + jnp.dot(ste, wste_ref[...], preferred_element_type=f32)
    qkv = jnp.maximum(qkv + bqkv_ref[...], 0.0)                  # [rows, 3D] f32
    qkv_m = qkv.astype(matmul_dtype)                             # hoisted cast

    w15 = w15_ref[...]                                           # [D, D]
    h15 = jnp.zeros((rows, D), f32)
    for h in range(K):                                           # static unroll
        q_h = qkv_m[:, h * d:(h + 1) * d].reshape(Nb, T, d)
        k_h = qkv_m[:, D + h * d:D + (h + 1) * d].reshape(Nb, T, d)
        v_h = qkv_m[:, 2 * D + h * d:2 * D + (h + 1) * d].reshape(Nb, T, d)

        s = jnp.einsum('bqd,bkd->bqk', q_h, k_h,
                       preferred_element_type=f32)               # [Nb, T, T]
        s = s - jnp.max(s, axis=-1, keepdims=True)
        e = jnp.exp(s)
        p = e * pl.reciprocal(jnp.sum(e, axis=-1, keepdims=True), approx=True)
        o_h = jnp.einsum('bqk,bkd->bqd', p.astype(matmul_dtype), v_h,
                         preferred_element_type=f32)             # [Nb, T, d]

        # Accumulate straight into the fc15 projection -> no head concat.
        h15 = h15 + jnp.dot(o_h.reshape(rows, d).astype(matmul_dtype),
                            w15[h * d:(h + 1) * d, :],
                            preferred_element_type=f32)

    h15 = jnp.maximum(h15 + b15_ref[...], 0.0)                   # [rows, D]
    y = jnp.dot(h15.astype(matmul_dtype), w16_ref[...],
                preferred_element_type=f32) + b16_ref[...]       # [rows, D]

    # Back to (t, n) row order and store directly into the [B, T, N, D] block.
    o_ref[0] = _swap01(y.reshape(Nb, T, D)).astype(o_ref.dtype)


def temporal_attention_pallas(X, STE, params, *, K, d,
                              matmul_dtype=jnp.bfloat16,
                              max_rows_per_block=4096):
    """X, STE: [B, T, N, D] float32. Returns [B, T, N, D]."""
    B, T, N, D = X.shape
    assert D == K * d and STE.shape == X.shape

    # Node tiling: keep the full node dim per block when it fits the row
    # target; otherwise tile nodes in multiples of 8 (BlockSpec sublane rule)
    # and zero-pad N.  The test / typical sizes take the no-pad path, so the
    # activations reach the kernel with zero XLA-side copies.
    if T * N <= max_rows_per_block or N <= 8:
        Nb, N_pad = N, N
    else:
        Nb = max(8, (max_rows_per_block // T) // 8 * 8)
        N_pad = pl.cdiv(N, Nb) * Nb
        if N_pad != N:
            # TODO(synk): this very-large-N fallback materializes padded copies.
            pad = ((0, 0), (0, 0), (0, N_pad - N), (0, 0))
            X = jnp.pad(X, pad)
            STE = jnp.pad(STE, pad)
    n_nblocks = N_pad // Nb

    def wt(name):  # torch Linear weight is [out, in]; transpose to [in, out]
        return jnp.asarray(params["w" + name], jnp.float32).T

    def bt(name):
        return jnp.asarray(params["b" + name], jnp.float32).reshape(1, -1)

    inv_sqrt_d = 1.0 / (float(d) ** 0.5)
    # Fused QKV weight [2D, 3D], split into X rows / STE rows so the kernel
    # never needs concatenated activations; 1/sqrt(d) folded into Q.
    wqkv = jnp.concatenate([wt("12") * inv_sqrt_d, wt("13"), wt("14")], axis=1)
    bqkv = jnp.concatenate([bt("12") * inv_sqrt_d, bt("13"), bt("14")], axis=1)
    wx = wqkv[:D].astype(matmul_dtype)
    wste = wqkv[D:].astype(matmul_dtype)
    w15 = wt("15").astype(matmul_dtype)
    w16 = wt("16").astype(matmul_dtype)
    b15, b16 = bt("15"), bt("16")

    act_spec = pl.BlockSpec((1, T, Nb, D), lambda b, n: (b, 0, n, 0))
    cmap = lambda b, n: (0, 0)

    out = pl.pallas_call(
        functools.partial(_temporal_attn_kernel, T=T, Nb=Nb, K=K, d=d,
                          matmul_dtype=matmul_dtype),
        out_shape=jax.ShapeDtypeStruct((B, T, N_pad, D), X.dtype),
        grid=(B, n_nblocks),
        in_specs=[
            act_spec,                               # X block
            act_spec,                               # STE block
            pl.BlockSpec((D, 3 * D), cmap),         # Wqkv (X rows)
            pl.BlockSpec((D, 3 * D), cmap),         # Wqkv (STE rows)
            pl.BlockSpec((1, 3 * D), cmap),         # bqkv
            pl.BlockSpec((D, D), cmap),             # W15
            pl.BlockSpec((1, D), cmap),             # b15
            pl.BlockSpec((D, D), cmap),             # W16
            pl.BlockSpec((1, D), cmap),             # b16
        ],
        out_specs=act_spec,
        compiler_params=pltpu.CompilerParams(
            dimension_semantics=("parallel", "parallel")),
    )(X, STE, wx, wste, bqkv, w15, b15, w16, b16)

    if N_pad != N:
        out = out[:, :, :N, :]
    return out


def temporal_attention_ref(X, STE, params, *, K, d):
    """Pure-JAX reference replicating the PyTorch forward exactly."""
    def lin(x, w, b):
        return x @ w.T + b  # torch Linear: weight [out, in]

    x = jnp.concatenate([X, STE], axis=-1)
    q = jax.nn.relu(lin(x, params["w12"], params["b12"]))
    k = jax.nn.relu(lin(x, params["w13"], params["b13"]))
    v = jax.nn.relu(lin(x, params["w14"], params["b14"]))

    q = jnp.concatenate(jnp.split(q, K, axis=-1), axis=0)   # [K*B, T, N, d]
    k = jnp.concatenate(jnp.split(k, K, axis=-1), axis=0)
    v = jnp.concatenate(jnp.split(v, K, axis=-1), axis=0)

    q = jnp.swapaxes(q, 2, 1)                                # [K*B, N, T, d]
    k = jnp.transpose(jnp.swapaxes(k, 1, 2), (0, 1, 3, 2))   # [K*B, N, d, T]
    v = jnp.swapaxes(v, 2, 1)                                # [K*B, N, T, d]

    att = jnp.matmul(q, k) / (float(d) ** 0.5)
    att = jax.nn.softmax(att, axis=-1)
    out = jnp.matmul(att, v)                                 # [K*B, N, T, d]
    out = jnp.swapaxes(out, 2, 1)                            # [K*B, T, N, d]
    out = jnp.concatenate(jnp.split(out, K, axis=0), axis=-1)  # [B, T, N, D]

    h = jax.nn.relu(lin(out, params["w15"], params["b15"]))
    return lin(h, params["w16"], params["b16"])


def init_params(key, K, d):
    """Deterministic init mimicking torch.nn.Linear default (uniform +-1/sqrt(fan_in))."""
    D = K * d
    params = {}
    specs = {
        "12": (D, 2 * D), "13": (D, 2 * D), "14": (D, 2 * D),
        "15": (D, D), "16": (D, D),
    }
    for name, (out_f, in_f) in specs.items():
        key, kw, kb = jax.random.split(key, 3)
        bound = 1.0 / (in_f ** 0.5)
        params["w" + name] = jax.random.uniform(
            kw, (out_f, in_f), jnp.float32, -bound, bound)
        params["b" + name] = jax.random.uniform(
            kb, (out_f,), jnp.float32, -bound, bound)
    return params


if __name__ == "__main__":
    K, d = 4, 8          # D = 32
    B, T, N = 2, 8, 4    # batch, time steps, nodes
    D = K * d

    key = jax.random.PRNGKey(0)
    kx, ks, kp = jax.random.split(key, 3)
    X = jax.random.normal(kx, (B, T, N, D), jnp.float32)
    STE = jax.random.normal(ks, (B, T, N, D), jnp.float32)
    params = init_params(kp, K, d)

    ref = jax.block_until_ready(temporal_attention_ref(X, STE, params, K=K, d=d))

    # Default fast path: bf16 MXU inputs, f32 accumulation (bf16-appropriate tol).
    out = jax.block_until_ready(temporal_attention_pallas(X, STE, params, K=K, d=d))
    assert out.shape == (B, T, N, D), out.shape
    assert jnp.allclose(out, ref, atol=5e-2, rtol=5e-2), \
        float(jnp.max(jnp.abs(out - ref)))

    # f32 MXU path for a tight numerical check (only the approx-reciprocal
    # softmax denominator deviates from the pure-JAX reference).
    out32 = jax.block_until_ready(
        temporal_attention_pallas(X, STE, params, K=K, d=d,
                                  matmul_dtype=jnp.float32))
    assert jnp.allclose(out32, ref, atol=5e-3, rtol=5e-3), \
        float(jnp.max(jnp.abs(out32 - ref)))

    print("KERNEL_OK")
</pallas_src>

<mosaic_0001>
module attributes {stable_mosaic.version = 11 : i64} {
  func.func @_temporal_attn_kernel(%arg0: i32, %arg1: i32, %arg2: memref<1x8x4x32xf32, #tpu.memory_space<vmem>>, %arg3: memref<1x8x4x32xf32, #tpu.memory_space<vmem>>, %arg4: memref<32x96xbf16, #tpu.memory_space<vmem>>, %arg5: memref<32x96xbf16, #tpu.memory_space<vmem>>, %arg6: memref<1x96xf32, #tpu.memory_space<vmem>>, %arg7: memref<32x32xbf16, #tpu.memory_space<vmem>>, %arg8: memref<1x32xf32, #tpu.memory_space<vmem>>, %arg9: memref<32x32xbf16, #tpu.memory_space<vmem>>, %arg10: memref<1x32xf32, #tpu.memory_space<vmem>>, %arg11: memref<1x8x4x32xf32, #tpu.memory_space<vmem>>) attributes {dimension_semantics = [#tpu.dimension_semantics<parallel>, #tpu.dimension_semantics<parallel>], iteration_bounds = array<i64: 2, 1>, scalar_prefetch = 0 : i64, scratch_operands = 0 : i64, tpu.core_type = #tpu.core_type<tc>, window_params = [{transform_indices = @transform_0, window_bounds = array<i64: 1, 8, 4, 32>}, {transform_indices = @transform_1, window_bounds = array<i64: 1, 8, 4, 32>}, {pipeline_mode = #tpu.pipeline_mode<synchronous>, transform_indices = @transform_2, window_bounds = array<i64: 32, 96>}, {pipeline_mode = #tpu.pipeline_mode<synchronous>, transform_indices = @transform_3, window_bounds = array<i64: 32, 96>}, {pipeline_mode = #tpu.pipeline_mode<synchronous>, transform_indices = @transform_4, window_bounds = array<i64: 1, 96>}, {pipeline_mode = #tpu.pipeline_mode<synchronous>, transform_indices = @transform_5, window_bounds = array<i64: 32, 32>}, {pipeline_mode = #tpu.pipeline_mode<synchronous>, transform_indices = @transform_6, window_bounds = array<i64: 1, 32>}, {pipeline_mode = #tpu.pipeline_mode<synchronous>, transform_indices = @transform_7, window_bounds = array<i64: 32, 32>}, {pipeline_mode = #tpu.pipeline_mode<synchronous>, transform_indices = @transform_8, window_bounds = array<i64: 1, 32>}, {transform_indices = @transform_9, window_bounds = array<i64: 1, 8, 4, 32>}]} {
    %c0 = arith.constant 0 : index
    %c0_0 = arith.constant 0 : index
    %c0_1 = arith.constant 0 : index
    %c0_2 = arith.constant 0 : index
    %0 = vector.load %arg2[%c0, %c0_0, %c0_1, %c0_2] : memref<1x8x4x32xf32, #tpu.memory_space<vmem>>, vector<1x8x4x32xf32>
    %1 = vector.shape_cast %0 : vector<1x8x4x32xf32> to vector<8x4x32xf32>
    %2 = tpu.transpose %1, [1, 0, 2] : vector<8x4x32xf32> -> vector<4x8x32xf32>
    %3 = vector.shape_cast %2 : vector<4x8x32xf32> to vector<32x32xf32>
    %4 = arith.truncf %3 : vector<32x32xf32> to vector<32x32xbf16>
    %c0_3 = arith.constant 0 : index
    %c0_4 = arith.constant 0 : index
    %c0_5 = arith.constant 0 : index
    %c0_6 = arith.constant 0 : index
    %5 = vector.load %arg3[%c0_3, %c0_4, %c0_5, %c0_6] : memref<1x8x4x32xf32, #tpu.memory_space<vmem>>, vector<1x8x4x32xf32>
    %6 = vector.shape_cast %5 : vector<1x8x4x32xf32> to vector<8x4x32xf32>
    %7 = tpu.transpose %6, [1, 0, 2] : vector<8x4x32xf32> -> vector<4x8x32xf32>
    %8 = vector.shape_cast %7 : vector<4x8x32xf32> to vector<32x32xf32>
    %9 = arith.truncf %8 : vector<32x32xf32> to vector<32x32xbf16>
    %c0_7 = arith.constant 0 : index
    %c0_8 = arith.constant 0 : index
    %10 = vector.load %arg4[%c0_7, %c0_8] : memref<32x96xbf16, #tpu.memory_space<vmem>>, vector<32x96xbf16>
    %cst = arith.constant dense<0.000000e+00> : vector<32x96xf32>
    %11 = tpu.matmul %4, %10, %cst {dimension_numbers = #tpu.dot_dimension_numbers<[1], [0], [0], [1], [0, 0, 1, 1], [], []>} : vector<32x32xbf16>, vector<32x96xbf16>, vector<32x96xf32> -> vector<32x96xf32>
    %c0_9 = arith.constant 0 : index
    %c0_10 = arith.constant 0 : index
    %12 = vector.load %arg5[%c0_9, %c0_10] : memref<32x96xbf16, #tpu.memory_space<vmem>>, vector<32x96xbf16>
    %cst_11 = arith.constant dense<0.000000e+00> : vector<32x96xf32>
    %13 = tpu.matmul %9, %12, %cst_11 {dimension_numbers = #tpu.dot_dimension_numbers<[1], [0], [0], [1], [0, 0, 1, 1], [], []>} : vector<32x32xbf16>, vector<32x96xbf16>, vector<32x96xf32> -> vector<32x96xf32>
    %14 = arith.addf %11, %13 : vector<32x96xf32>
    %c0_12 = arith.constant 0 : index
    %c0_13 = arith.constant 0 : index
    %15 = vector.load %arg6[%c0_12, %c0_13] : memref<1x96xf32, #tpu.memory_space<vmem>>, vector<1x96xf32>
    %16 = vector.broadcast %15 : vector<1x96xf32> to vector<32x96xf32>
    %17 = arith.addf %14, %16 : vector<32x96xf32>
    %cst_14 = arith.constant 0.000000e+00 : f32
    %18 = vector.broadcast %cst_14 : f32 to vector<32x96xf32>
    %19 = arith.maximumf %17, %18 : vector<32x96xf32>
    %20 = arith.truncf %19 : vector<32x96xf32> to vector<32x96xbf16>
    %c0_15 = arith.constant 0 : index
    %c0_16 = arith.constant 0 : index
    %21 = vector.load %arg7[%c0_15, %c0_16] : memref<32x32xbf16, #tpu.memory_space<vmem>>, vector<32x32xbf16>
    %cst_17 = arith.constant 0.000000e+00 : f32
    %22 = vector.broadcast %cst_17 : f32 to vector<32x32xf32>
    %23 = vector.extract_strided_slice %20 {offsets = [0, 0], sizes = [32, 8], strides = [1, 1]} : vector<32x96xbf16> to vector<32x8xbf16>
    %24 = vector.shape_cast %23 : vector<32x8xbf16> to vector<4x8x8xbf16>
    %25 = vector.extract_strided_slice %20 {offsets = [0, 32], sizes = [32, 8], strides = [1, 1]} : vector<32x96xbf16> to vector<32x8xbf16>
    %26 = vector.shape_cast %25 : vector<32x8xbf16> to vector<4x8x8xbf16>
    %27 = vector.extract_strided_slice %20 {offsets = [0, 64], sizes = [32, 8], strides = [1, 1]} : vector<32x96xbf16> to vector<32x8xbf16>
    %28 = vector.shape_cast %27 : vector<32x8xbf16> to vector<4x8x8xbf16>
    "tpu.trace_start"() <{level = 10 : i32, message = "bqd,bkd->bqk"}> : () -> ()
    %cst_18 = arith.constant dense<0.000000e+00> : vector<4x8x8xf32>
    %29 = tpu.matmul %24, %26, %cst_18 {dimension_numbers = #tpu.dot_dimension_numbers<[2], [2], [1], [1], [0, 0, 0, 1, 1, 1], [0], [0]>} : vector<4x8x8xbf16>, vector<4x8x8xbf16>, vector<4x8x8xf32> -> vector<4x8x8xf32>
    "tpu.trace_stop"() : () -> ()
    %cst_19 = arith.constant dense<0xFF800000> : vector<4x8xf32>
    %30 = vector.multi_reduction <maximumf>, %29, %cst_19 [2] : vector<4x8x8xf32> to vector<4x8xf32>
    %31 = vector.shape_cast %30 : vector<4x8xf32> to vector<4x8x1xf32>
    %32 = vector.broadcast %31 : vector<4x8x1xf32> to vector<4x8x8xf32>
    %33 = arith.subf %29, %32 : vector<4x8x8xf32>
    %34 = math.exp %33 : vector<4x8x8xf32>
    %cst_20 = arith.constant dense<0.000000e+00> : vector<4x8xf32>
    %35 = vector.multi_reduction <add>, %34, %cst_20 [2] : vector<4x8x8xf32> to vector<4x8xf32>
    %36 = vector.shape_cast %35 : vector<4x8xf32> to vector<4x8x1xf32>
    %37 = tpu.reciprocal %36 {approx = true} : vector<4x8x1xf32> -> vector<4x8x1xf32>
    %38 = vector.broadcast %37 : vector<4x8x1xf32> to vector<4x8x8xf32>
    %39 = arith.mulf %34, %38 : vector<4x8x8xf32>
    %40 = arith.truncf %39 : vector<4x8x8xf32> to vector<4x8x8xbf16>
    "tpu.trace_start"() <{level = 10 : i32, message = "bqk,bkd->bqd"}> : () -> ()
    %cst_21 = arith.constant dense<0.000000e+00> : vector<4x8x8xf32>
    %41 = tpu.matmul %40, %28, %cst_21 {dimension_numbers = #tpu.dot_dimension_numbers<[2], [1], [1], [2], [0, 0, 0, 1, 1, 2], [0], [0]>} : vector<4x8x8xbf16>, vector<4x8x8xbf16>, vector<4x8x8xf32> -> vector<4x8x8xf32>
    "tpu.trace_stop"() : () -> ()
    %42 = vector.shape_cast %41 : vector<4x8x8xf32> to vector<32x8xf32>
    %43 = arith.truncf %42 : vector<32x8xf32> to vector<32x8xbf16>
    %44 = vector.extract_strided_slice %21 {offsets = [0, 0], sizes = [8, 32], strides = [1, 1]} : vector<32x32xbf16> to vector<8x32xbf16>
    %cst_22 = arith.constant dense<0.000000e+00> : vector<32x32xf32>
    %45 = tpu.matmul %43, %44, %cst_22 {dimension_numbers = #tpu.dot_dimension_numbers<[1], [0], [0], [1], [0, 0, 1, 1], [], []>} : vector<32x8xbf16>, vector<8x32xbf16>, vector<32x32xf32> -> vector<32x32xf32>
    %46 = arith.addf %22, %45 : vector<32x32xf32>
    %47 = vector.extract_strided_slice %20 {offsets = [0, 8], sizes = [32, 8], strides = [1, 1]} : vector<32x96xbf16> to vector<32x8xbf16>
    %48 = vector.shape_cast %47 : vector<32x8xbf16> to vector<4x8x8xbf16>
    %49 = vector.extract_strided_slice %20 {offsets = [0, 40], sizes = [32, 8], strides = [1, 1]} : vector<32x96xbf16> to vector<32x8xbf16>
    %50 = vector.shape_cast %49 : vector<32x8xbf16> to vector<4x8x8xbf16>
    %51 = vector.extract_strided_slice %20 {offsets = [0, 72], sizes = [32, 8], strides = [1, 1]} : vector<32x96xbf16> to vector<32x8xbf16>
    %52 = vector.shape_cast %51 : vector<32x8xbf16> to vector<4x8x8xbf16>
    "tpu.trace_start"() <{level = 10 : i32, message = "bqd,bkd->bqk"}> : () -> ()
    %cst_23 = arith.constant dense<0.000000e+00> : vector<4x8x8xf32>
    %53 = tpu.matmul %48, %50, %cst_23 {dimension_numbers = #tpu.dot_dimension_numbers<[2], [2], [1], [1], [0, 0, 0, 1, 1, 1], [0], [0]>} : vector<4x8x8xbf16>, vector<4x8x8xbf16>, vector<4x8x8xf32> -> vector<4x8x8xf32>
    "tpu.trace_stop"() : () -> ()
    %cst_24 = arith.constant dense<0xFF800000> : vector<4x8xf32>
    %54 = vector.multi_reduction <maximumf>, %53, %cst_24 [2] : vector<4x8x8xf32> to vector<4x8xf32>
    %55 = vector.shape_cast %54 : vector<4x8xf32> to vector<4x8x1xf32>
    %56 = vector.broadcast %55 : vector<4x8x1xf32> to vector<4x8x8xf32>
    %57 = arith.subf %53, %56 : vector<4x8x8xf32>
    %58 = math.exp %57 : vector<4x8x8xf32>
    %cst_25 = arith.constant dense<0.000000e+00> : vector<4x8xf32>
    %59 = vector.multi_reduction <add>, %58, %cst_25 [2] : vector<4x8x8xf32> to vector<4x8xf32>
    %60 = vector.shape_cast %59 : vector<4x8xf32> to vector<4x8x1xf32>
    %61 = tpu.reciprocal %60 {approx = true} : vector<4x8x1xf32> -> vector<4x8x1xf32>
    %62 = vector.broadcast %61 : vector<4x8x1xf32> to vector<4x8x8xf32>
    %63 = arith.mulf %58, %62 : vector<4x8x8xf32>
    %64 = arith.truncf %63 : vector<4x8x8xf32> to vector<4x8x8xbf16>
    "tpu.trace_start"() <{level = 10 : i32, message = "bqk,bkd->bqd"}> : () -> ()
    %cst_26 = arith.constant dense<0.000000e+00> : vector<4x8x8xf32>
    %65 = tpu.matmul %64, %52, %cst_26 {dimension_numbers = #tpu.dot_dimension_numbers<[2], [1], [1], [2], [0, 0, 0, 1, 1, 2], [0], [0]>} : vector<4x8x8xbf16>, vector<4x8x8xbf16>, vector<4x8x8xf32> -> vector<4x8x8xf32>
    "tpu.trace_stop"() : () -> ()
    %66 = vector.shape_cast %65 : vector<4x8x8xf32> to vector<32x8xf32>
    %67 = arith.truncf %66 : vector<32x8xf32> to vector<32x8xbf16>
    %68 = vector.extract_strided_slice %21 {offsets = [8, 0], sizes = [8, 32], strides = [1, 1]} : vector<32x32xbf16> to vector<8x32xbf16>
    %cst_27 = arith.constant dense<0.000000e+00> : vector<32x32xf32>
    %69 = tpu.matmul %67, %68, %cst_27 {dimension_numbers = #tpu.dot_dimension_numbers<[1], [0], [0], [1], [0, 0, 1, 1], [], []>} : vector<32x8xbf16>, vector<8x32xbf16>, vector<32x32xf32> -> vector<32x32xf32>
    %70 = arith.addf %46, %69 : vector<32x32xf32>
    %71 = vector.extract_strided_slice %20 {offsets = [0, 16], sizes = [32, 8], strides = [1, 1]} : vector<32x96xbf16> to vector<32x8xbf16>
    %72 = vector.shape_cast %71 : vector<32x8xbf16> to vector<4x8x8xbf16>
    %73 = vector.extract_strided_slice %20 {offsets = [0, 48], sizes = [32, 8], strides = [1, 1]} : vector<32x96xbf16> to vector<32x8xbf16>
    %74 = vector.shape_cast %73 : vector<32x8xbf16> to vector<4x8x8xbf16>
    %75 = vector.extract_strided_slice %20 {offsets = [0, 80], sizes = [32, 8], strides = [1, 1]} : vector<32x96xbf16> to vector<32x8xbf16>
    %76 = vector.shape_cast %75 : vector<32x8xbf16> to vector<4x8x8xbf16>
    "tpu.trace_start"() <{level = 10 : i32, message = "bqd,bkd->bqk"}> : () -> ()
    %cst_28 = arith.constant dense<0.000000e+00> : vector<4x8x8xf32>
    %77 = tpu.matmul %72, %74, %cst_28 {dimension_numbers = #tpu.dot_dimension_numbers<[2], [2], [1], [1], [0, 0, 0, 1, 1, 1], [0], [0]>} : vector<4x8x8xbf16>, vector<4x8x8xbf16>, vector<4x8x8xf32> -> vector<4x8x8xf32>
    "tpu.trace_stop"() : () -> ()
    %cst_29 = arith.constant dense<0xFF800000> : vector<4x8xf32>
    %78 = vector.multi_reduction <maximumf>, %77, %cst_29 [2] : vector<4x8x8xf32> to vector<4x8xf32>
    %79 = vector.shape_cast %78 : vector<4x8xf32> to vector<4x8x1xf32>
    %80 = vector.broadcast %79 : vector<4x8x1xf32> to vector<4x8x8xf32>
    %81 = arith.subf %77, %80 : vector<4x8x8xf32>
    %82 = math.exp %81 : vector<4x8x8xf32>
    %cst_30 = arith.constant dense<0.000000e+00> : vector<4x8xf32>
    %83 = vector.multi_reduction <add>, %82, %cst_30 [2] : vector<4x8x8xf32> to vector<4x8xf32>
    %84 = vector.shape_cast %83 : vector<4x8xf32> to vector<4x8x1xf32>
    %85 = tpu.reciprocal %84 {approx = true} : vector<4x8x1xf32> -> vector<4x8x1xf32>
    %86 = vector.broadcast %85 : vector<4x8x1xf32> to vector<4x8x8xf32>
    %87 = arith.mulf %82, %86 : vector<4x8x8xf32>
    %88 = arith.truncf %87 : vector<4x8x8xf32> to vector<4x8x8xbf16>
    "tpu.trace_start"() <{level = 10 : i32, message = "bqk,bkd->bqd"}> : () -> ()
    %cst_31 = arith.constant dense<0.000000e+00> : vector<4x8x8xf32>
    %89 = tpu.matmul %88, %76, %cst_31 {dimension_numbers = #tpu.dot_dimension_numbers<[2], [1], [1], [2], [0, 0, 0, 1, 1, 2], [0], [0]>} : vector<4x8x8xbf16>, vector<4x8x8xbf16>, vector<4x8x8xf32> -> vector<4x8x8xf32>
    "tpu.trace_stop"() : () -> ()
    %90 = vector.shape_cast %89 : vector<4x8x8xf32> to vector<32x8xf32>
    %91 = arith.truncf %90 : vector<32x8xf32> to vector<32x8xbf16>
    %92 = vector.extract_strided_slice %21 {offsets = [16, 0], sizes = [8, 32], strides = [1, 1]} : vector<32x32xbf16> to vector<8x32xbf16>
    %cst_32 = arith.constant dense<0.000000e+00> : vector<32x32xf32>
    %93 = tpu.matmul %91, %92, %cst_32 {dimension_numbers = #tpu.dot_dimension_numbers<[1], [0], [0], [1], [0, 0, 1, 1], [], []>} : vector<32x8xbf16>, vector<8x32xbf16>, vector<32x32xf32> -> vector<32x32xf32>
    %94 = arith.addf %70, %93 : vector<32x32xf32>
    %95 = vector.extract_strided_slice %20 {offsets = [0, 24], sizes = [32, 8], strides = [1, 1]} : vector<32x96xbf16> to vector<32x8xbf16>
    %96 = vector.shape_cast %95 : vector<32x8xbf16> to vector<4x8x8xbf16>
    %97 = vector.extract_strided_slice %20 {offsets = [0, 56], sizes = [32, 8], strides = [1, 1]} : vector<32x96xbf16> to vector<32x8xbf16>
    %98 = vector.shape_cast %97 : vector<32x8xbf16> to vector<4x8x8xbf16>
    %99 = vector.extract_strided_slice %20 {offsets = [0, 88], sizes = [32, 8], strides = [1, 1]} : vector<32x96xbf16> to vector<32x8xbf16>
    %100 = vector.shape_cast %99 : vector<32x8xbf16> to vector<4x8x8xbf16>
    "tpu.trace_start"() <{level = 10 : i32, message = "bqd,bkd->bqk"}> : () -> ()
    %cst_33 = arith.constant dense<0.000000e+00> : vector<4x8x8xf32>
    %101 = tpu.matmul %96, %98, %cst_33 {dimension_numbers = #tpu.dot_dimension_numbers<[2], [2], [1], [1], [0, 0, 0, 1, 1, 1], [0], [0]>} : vector<4x8x8xbf16>, vector<4x8x8xbf16>, vector<4x8x8xf32> -> vector<4x8x8xf32>
    "tpu.trace_stop"() : () -> ()
    %cst_34 = arith.constant dense<0xFF800000> : vector<4x8xf32>
    %102 = vector.multi_reduction <maximumf>, %101, %cst_34 [2] : vector<4x8x8xf32> to vector<4x8xf32>
    %103 = vector.shape_cast %102 : vector<4x8xf32> to vector<4x8x1xf32>
    %104 = vector.broadcast %103 : vector<4x8x1xf32> to vector<4x8x8xf32>
    %105 = arith.subf %101, %104 : vector<4x8x8xf32>
    %106 = math.exp %105 : vector<4x8x8xf32>
    %cst_35 = arith.constant dense<0.000000e+00> : vector<4x8xf32>
    %107 = vector.multi_reduction <add>, %106, %cst_35 [2] : vector<4x8x8xf32> to vector<4x8xf32>
    %108 = vector.shape_cast %107 : vector<4x8xf32> to vector<4x8x1xf32>
    %109 = tpu.reciprocal %108 {approx = true} : vector<4x8x1xf32> -> vector<4x8x1xf32>
    %110 = vector.broadcast %109 : vector<4x8x1xf32> to vector<4x8x8xf32>
    %111 = arith.mulf %106, %110 : vector<4x8x8xf32>
    %112 = arith.truncf %111 : vector<4x8x8xf32> to vector<4x8x8xbf16>
    "tpu.trace_start"() <{level = 10 : i32, message = "bqk,bkd->bqd"}> : () -> ()
    %cst_36 = arith.constant dense<0.000000e+00> : vector<4x8x8xf32>
    %113 = tpu.matmul %112, %100, %cst_36 {dimension_numbers = #tpu.dot_dimension_numbers<[2], [1], [1], [2], [0, 0, 0, 1, 1, 2], [0], [0]>} : vector<4x8x8xbf16>, vector<4x8x8xbf16>, vector<4x8x8xf32> -> vector<4x8x8xf32>
    "tpu.trace_stop"() : () -> ()
    %114 = vector.shape_cast %113 : vector<4x8x8xf32> to vector<32x8xf32>
    %115 = arith.truncf %114 : vector<32x8xf32> to vector<32x8xbf16>
    %116 = vector.extract_strided_slice %21 {offsets = [24, 0], sizes = [8, 32], strides = [1, 1]} : vector<32x32xbf16> to vector<8x32xbf16>
    %cst_37 = arith.constant dense<0.000000e+00> : vector<32x32xf32>
    %117 = tpu.matmul %115, %116, %cst_37 {dimension_numbers = #tpu.dot_dimension_numbers<[1], [0], [0], [1], [0, 0, 1, 1], [], []>} : vector<32x8xbf16>, vector<8x32xbf16>, vector<32x32xf32> -> vector<32x32xf32>
    %118 = arith.addf %94, %117 : vector<32x32xf32>
    %c0_38 = arith.constant 0 : index
    %c0_39 = arith.constant 0 : index
    %119 = vector.load %arg8[%c0_38, %c0_39] : memref<1x32xf32, #tpu.memory_space<vmem>>, vector<1x32xf32>
    %120 = vector.broadcast %119 : vector<1x32xf32> to vector<32x32xf32>
    %121 = arith.addf %118, %120 : vector<32x32xf32>
    %cst_40 = arith.constant 0.000000e+00 : f32
    %122 = vector.broadcast %cst_40 : f32 to vector<32x32xf32>
    %123 = arith.maximumf %121, %122 : vector<32x32xf32>
    %124 = arith.truncf %123 : vector<32x32xf32> to vector<32x32xbf16>
    %c0_41 = arith.constant 0 : index
    %c0_42 = arith.constant 0 : index
    %125 = vector.load %arg9[%c0_41, %c0_42] : memref<32x32xbf16, #tpu.memory_space<vmem>>, vector<32x32xbf16>
    %cst_43 = arith.constant dense<0.000000e+00> : vector<32x32xf32>
    %126 = tpu.matmul %124, %125, %cst_43 {dimension_numbers = #tpu.dot_dimension_numbers<[1], [0], [0], [1], [0, 0, 1, 1], [], []>} : vector<32x32xbf16>, vector<32x32xbf16>, vector<32x32xf32> -> vector<32x32xf32>
    %c0_44 = arith.constant 0 : index
    %c0_45 = arith.constant 0 : index
    %127 = vector.load %arg10[%c0_44, %c0_45] : memref<1x32xf32, #tpu.memory_space<vmem>>, vector<1x32xf32>
    %128 = vector.broadcast %127 : vector<1x32xf32> to vector<32x32xf32>
    %129 = arith.addf %126, %128 : vector<32x32xf32>
    %130 = vector.shape_cast %129 : vector<32x32xf32> to vector<4x8x32xf32>
    %131 = tpu.transpose %130, [1, 0, 2] : vector<4x8x32xf32> -> vector<8x4x32xf32>
    %c0_46 = arith.constant 0 : index
    %c0_47 = arith.constant 0 : index
    %c0_48 = arith.constant 0 : index
    %c0_49 = arith.constant 0 : index
    %132 = vector.load %arg11[%c0_46, %c0_47, %c0_48, %c0_49] : memref<1x8x4x32xf32, #tpu.memory_space<vmem>>, vector<1x8x4x32xf32>
    %133 = vector.shape_cast %132 : vector<1x8x4x32xf32> to vector<8x4x32xf32>
    %134 = vector.shape_cast %131 : vector<8x4x32xf32> to vector<1x8x4x32xf32>
    tpu.vector_store %arg11[%c0_46, %c0_47, %c0_48, %c0_49], %134 {strides = array<i32>} : memref<1x8x4x32xf32, #tpu.memory_space<vmem>>, vector<1x8x4x32xf32>,
    return
  }
  func.func @transform_0(%arg0: i32, %arg1: i32) -> (i32, i32, i32, i32) {
    %c0_i32 = arith.constant 0 : i32
    %c0_i32_0 = arith.constant 0 : i32
    %c0_i32_1 = arith.constant 0 : i32
    return %arg0, %c0_i32, %arg1, %c0_i32_0 : i32, i32, i32, i32
  }
  func.func @transform_1(%arg0: i32, %arg1: i32) -> (i32, i32, i32, i32) {
    %c0_i32 = arith.constant 0 : i32
    %c0_i32_0 = arith.constant 0 : i32
    %c0_i32_1 = arith.constant 0 : i32
    return %arg0, %c0_i32, %arg1, %c0_i32_0 : i32, i32, i32, i32
  }
  func.func @transform_2(%arg0: i32, %arg1: i32) -> (i32, i32) {
    %c0_i32 = arith.constant 0 : i32
    %c0_i32_0 = arith.constant 0 : i32
    %c0_i32_1 = arith.constant 0 : i32
    return %c0_i32, %c0_i32_0 : i32, i32
  }
  func.func @transform_3(%arg0: i32, %arg1: i32) -> (i32, i32) {
    %c0_i32 = arith.constant 0 : i32
    %c0_i32_0 = arith.constant 0 : i32
    %c0_i32_1 = arith.constant 0 : i32
    return %c0_i32, %c0_i32_0 : i32, i32
  }
  func.func @transform_4(%arg0: i32, %arg1: i32) -> (i32, i32) {
    %c0_i32 = arith.constant 0 : i32
    %c0_i32_0 = arith.constant 0 : i32
    %c0_i32_1 = arith.constant 0 : i32
    return %c0_i32, %c0_i32_0 : i32, i32
  }
  func.func @transform_5(%arg0: i32, %arg1: i32) -> (i32, i32) {
    %c0_i32 = arith.constant 0 : i32
    %c0_i32_0 = arith.constant 0 : i32
    %c0_i32_1 = arith.constant 0 : i32
    return %c0_i32, %c0_i32_0 : i32, i32
  }
  func.func @transform_6(%arg0: i32, %arg1: i32) -> (i32, i32) {
    %c0_i32 = arith.constant 0 : i32
    %c0_i32_0 = arith.constant 0 : i32
    %c0_i32_1 = arith.constant 0 : i32
    return %c0_i32, %c0_i32_0 : i32, i32
  }
  func.func @transform_7(%arg0: i32, %arg1: i32) -> (i32, i32) {
    %c0_i32 = arith.constant 0 : i32
    %c0_i32_0 = arith.constant 0 : i32
    %c0_i32_1 = arith.constant 0 : i32
    return %c0_i32, %c0_i32_0 : i32, i32
  }
  func.func @transform_8(%arg0: i32, %arg1: i32) -> (i32, i32) {
    %c0_i32 = arith.constant 0 : i32
    %c0_i32_0 = arith.constant 0 : i32
    %c0_i32_1 = arith.constant 0 : i32
    return %c0_i32, %c0_i32_0 : i32, i32
  }
  func.func @transform_9(%arg0: i32, %arg1: i32) -> (i32, i32, i32, i32) {
    %c0_i32 = arith.constant 0 : i32
    %c0_i32_0 = arith.constant 0 : i32
    %c0_i32_1 = arith.constant 0 : i32
    return %arg0, %c0_i32, %arg1, %c0_i32_0 : i32, i32, i32, i32
  }
}

</mosaic_0001>

<bundles_post_ra>
// kernel: tpu_custom_call.1
= control target key start
LH: loop header
LB: loop body
LE: loop exit
PB: predicated region body
PF: predicated region fallthrough
CT: control target
= control target key end

     0   :  { %s4770_s0 = inlined_call_operand.hbm [shape: f32[2,8,4,32], index: 0, kind: input, shape index: {}]   ;;  %s4771_s1 = inlined_call_operand.hbm [shape: f32[2,8,4,32], index: 1, kind: input, shape index: {}]   ;;  %s4772_s2 = inlined_call_operand.hbm [shape: bf16[32,96], index: 2, kind: input, shape index: {}]   ;;  %s4773_s3 = inlined_call_operand.hbm [shape: bf16[32,96], index: 3, kind: input, shape index: {}]   ;;  %s4774_s4 = inlined_call_operand.vmem [shape: f32[1,96], index: 4, kind: input, shape index: {}]   ;;  %s4775_s5 = inlined_call_operand.vmem [shape: bf16[32,32], index: 5, kind: input, shape index: {}]   ;;  %s4776_s6 = inlined_call_operand.vmem [shape: f32[1,32], index: 6, kind: input, shape index: {}]   ;;  %s4777_s7 = inlined_call_operand.hbm [shape: bf16[32,32], index: 7, kind: input, shape index: {}]   ;;  %s4778_s8 = inlined_call_operand.vmem [shape: f32[1,32], index: 8, kind: input, shape index: {}]   ;;  %s4779_s9 = inlined_call_operand.hbm [shape: f32[2,8,4,32], index: 9, kind: output, shape index: {}]  }
   0x1   :  { %4790 = sst [smem:[#allocation20_spill]] %s4770_s0 }
   0x2   :  { %4791 = sst [smem:[#allocation21_spill]] %s4772_s2 }
   0x3   :  { %4792 = sst [smem:[#allocation22_spill]] %s4773_s3 }
   0x4   :  { %4793 = sst [smem:[#allocation23_spill]] %s4778_s8 }
   0x5   :  { %4794 = sst [smem:[#allocation24_spill]] %s4779_s9 }
   0x6   :  { %14 = vsyncpa [#allocation3], 0 }
   0x7   :  { %16 = vsyncpa [#allocation3 + $0x1], 0 }
   0x8   :  { %17 = vsyncpa [#allocation6], 0 }
   0x9   :  { %19 = vsyncpa [#allocation6 + $0x1], 0 }
   0xa   :  { %20 = vsyncpa [#allocation9], 0 }
   0xb   :  { %21 = vsyncpa [#allocation4], 0 }
   0xc   :  { %23 = vsyncpa [#allocation4 + $0x1], 0  ;;  %s4059_s30 = smov 0   ;;  %s4061_s10 = smov 0  }
   0xd   :  { %s4063_s11 = smov 0   ;;  %s4065_s12 = smov 0  }
   0xe   :  { %s4067_s13 = smov 0   ;;  %s4069_s14 = smov 0  }
   0xf LB: > { %4795 = sst [smem:[#allocation17_spill]] %s3963_s30  ;;  %s4090_s15 = sadd.s32 4294967295, %s3983_s14   ;;  %s3983_s14 = sphi %s4069_s14, %s29_s14   ;;  %s3979_s13 = sphi %s4067_s13, %s4828_s13   ;;  %s3975_s12 = sphi %s4065_s12, %s4827_s12   ;;  %s3971_s11 = sphi %s4063_s11, %s4826_s11   ;;  %s3967_s10 = sphi %s4061_s10, %s4825_s10   ;;  %s3963_s30 = sphi %s4059_s30, %s4824_s30  }
  0x10   : > { %4796 = sst [smem:[#allocation18_spill]] %s3975_s12  ;;  %s3113_s16 = sadd.s32 4294967294, %s3983_s14  }
  0x11   : > { %p63_p0 = scmp.ne.s32.totalorder %s3967_s10, %s3963_s30  ;;  %p4781_p1 = scmp.eq.s32.totalorder %s4090_s15, 0 }
  0x12   : > { %p270_p3 = scmp.eq.s32.totalorder %s3113_s16, 1  ;;  %p3114_p5 = scmp.ge.s32.totalorder %s3983_s14, 1 }
  0x13   : > { %p4099_p4 = por %p4781_p1, %p63_p0  ;;  %p277_p7 = scmp.lt.s32.totalorder %s3983_s14, 3 }
  0x14   : > { %p4104_p6 = por %p270_p3, %p63_p0  ;;  %s3985_s20 = smov [#allocation7]  }
  0x15   : > { %s4797_s17 = scalar_select %p4099_p4, 1, 0 }
  0x16   : > { %s4798_s18 = scalar_select %p4104_p6, 1, 0 }
  0x17   : > { %p4109_p8 = pnand %p3114_p5, %p277_p7  ;;  %s289_s21 = sshll.u32 %s3985_s20, 4  ;;  %s4113_s21 = int_to_ptr.vmem [resolvable:$true] %s289_s21 }
  0x18   : > { %4799 = sst [smem:[#allocation19_spill]] %s4798_s18  ;;  %s3986_s23 = smov [#allocation8]  }
  0x19   : > { %s4800_s19 = scalar_select %p4109_p8, 1, 0 }
  0x1a   : > { %p3569_p9 = pneg %p4109_p8  ;;  %s302_s24 = sshll.u32 %s3986_s23, 4  ;;  %s4124_s24 = int_to_ptr.vmem [resolvable:$true] %s302_s24 }
  0x1b   : > { %s3987_s25 = smov [#allocation10]   ;;  %s4802_s2 = sld [smem:[#allocation21_spill]] }
  0x1c   : > { %p4120_p11 = pnand %p3569_p9, %p4781_p1  ;;  %s4126_s26 = sshll.u32 %s3987_s25, 4  ;;  %s325_s26 = int_to_ptr.vmem [resolvable:$true] %s4126_s26 }
  0x1e   : > { %p4136_p13 = pneg %p4120_p11 }
  0x21   : > { %s3745_s29 = scalar_lea.hbm %s4802_s2, 256 }
  0x22   : > { %p3746_p12 = scmp.ne.s32.totalorder %s4802_s2, %s3745_s29  ;;  %p3752_p5 = scmp.lt.u32.totalorder %s3745_s29, %s4802_s2 }
  0x24   : > { %p3748_p0 = pnand %p4136_p13, %p3746_p12 }
  0x26   : > { %p3749_p3 = pneg %p3748_p0 }
  0x28   : > { %p3754_p7 = pnand %p3752_p5, %p3749_p3 }
  0x2a   : > { %3757 = shalt.err (!%p3754_p7)
}
  0x2b   : > { %s3758_s27 = scalar_lea.vmem %s4113_s21, 256  ;;  %p3766_p2 = scmp.lt.s32.totalorder %s4113_s21, %s4113_s21 }
  0x2c   : > { %p3759_p9 = scmp.ne.s32.totalorder %s4113_s21, %s3758_s27  ;;  %p3767_p6 = scmp.lt.s32.totalorder %s3758_s27, %s3758_s27 }
  0x2e   : > { %p3761_p10 = pnand %p3759_p9, %p4136_p13  ;;  %p3768_p12 = por %p3767_p6, %p3766_p2 }
  0x30   : > { %p3762_p1 = pneg %p3761_p10 }
  0x32   : > { %p3769_p0 = pnand %p3768_p12, %p3762_p1 }
  0x34   : > { %3772 = shalt.err (!%p3769_p0)
}
  0x35   : > { %s4786_s28 = smov 64   ;;  %s4788_s29 = smov 4  }
  0x36   : > { %3572 = dma.hbm_to_vmem [thread:$0]  (!%p4120_p11), %s4802_s2, 256, %s4113_s21, [#allocation6], %s4786_s28, %s4786_s28, %s4788_s29  }
  0x37   : > { %s4804_s3 = sld [smem:[#allocation22_spill]] }
  0x3d   : > { %s3773_s27 = scalar_lea.hbm %s4804_s3, 256 }
  0x3e   : > { %p3774_p1 = scmp.ne.s32.totalorder %s4804_s3, %s3773_s27  ;;  %p3780_p10 = scmp.lt.u32.totalorder %s3773_s27, %s4804_s3 }
  0x40   : > { %p3776_p2 = pnand %p3774_p1, %p4136_p13 }
  0x42   : > { %p3777_p6 = pneg %p3776_p2 }
  0x44   : > { %p3782_p3 = pnand %p3780_p10, %p3777_p6 }
  0x46   : > { %3785 = shalt.err (!%p3782_p3)
}
  0x47   : > { %s3786_s21 = scalar_lea.vmem %s4124_s24, 256  ;;  %p3794_p12 = scmp.lt.s32.totalorder %s4124_s24, %s4124_s24 }
  0x48   : > { %p3787_p5 = scmp.ne.s32.totalorder %s4124_s24, %s3786_s21  ;;  %p3795_p0 = scmp.lt.s32.totalorder %s3786_s21, %s3786_s21 }
  0x4a   : > { %p3789_p7 = pnand %p3787_p5, %p4136_p13  ;;  %p3796_p1 = por %p3795_p0, %p3794_p12 }
  0x4c   : > { %p3790_p9 = pneg %p3789_p7 }
  0x4e   : > { %p3797_p2 = pnand %p3796_p1, %p3790_p9 }
  0x50   : > { %3800 = shalt.err (!%p3797_p2)
}
  0x51   : > { %3575 = dma.hbm_to_vmem [thread:$0]  (!%p4120_p11), %s4804_s3, 256, %s4124_s24, [#allocation9], %s4786_s28, %s4786_s28, %s4788_s29  }
  0x52   : > { %s3801_s16 = scalar_lea.hbm %s4777_s7, 256 }
  0x53   : > { %p3802_p6 = scmp.ne.s32.totalorder %s4777_s7, %s3801_s16  ;;  %p3808_p5 = scmp.lt.u32.totalorder %s3801_s16, %s4777_s7 }
  0x55   : > { %p3804_p10 = pnand %p3802_p6, %p4136_p13 }
  0x57   : > { %p3805_p3 = pneg %p3804_p10 }
  0x59   : > { %p3810_p7 = pnand %p3808_p5, %p3805_p3 }
  0x5b   : > { %3813 = shalt.err (!%p3810_p7)
}
  0x5c   : > { %s3814_s21 = scalar_lea.vmem %s325_s26, 256  ;;  %p3822_p1 = scmp.lt.s32.totalorder %s325_s26, %s325_s26 }
  0x5d   : > { %p3815_p9 = scmp.ne.s32.totalorder %s325_s26, %s3814_s21  ;;  %p3823_p2 = scmp.lt.s32.totalorder %s3814_s21, %s3814_s21 }
  0x5f   : > { %p3817_p12 = pnand %p3815_p9, %p4136_p13  ;;  %p3824_p4 = por %p3823_p2, %p3822_p1 }
  0x61   : > { %p3818_p0 = pneg %p3817_p12 }
  0x63   : > { %p3825_p8 = pnand %p3824_p4, %p3818_p0 }
  0x65   : > { %3828 = shalt.err (!%p3825_p8)
}
  0x66   : > { %3578 = dma.hbm_to_vmem [thread:$0]  (!%p4120_p11), %s4777_s7, 256, %s325_s26, [#allocation9], %s4786_s28, %s4786_s28, %s4788_s29  }
  0x67   : > { %s50_s18 = sadd.s32 1, %s3971_s11  ;;  %s41_s22 = sadd.s32 1, %s3979_s13 }
  0x68   : > { %p57_p4 = scmp.ne.s32.totalorder %s3971_s11, %s3967_s10  ;;  %p43_p8 = scmp.ge.s32.totalorder %s41_s22, 2 }
  0x69   : > { %p58_p13 = scmp.eq.s32.totalorder %s3983_s14, 0  ;;  %p4805_p6 = scmp.eq.s32.totalorder %s4090_s15, 1 }
  0x6a   : > { %p3593_p3 = scmp.lt.s32.totalorder %s3983_s14, 2  ;;  %s4830_s22 = smov (%p43_p8, %s41_s22), 0 }
  0x6b   : > { %p4215_p10 = por %p4805_p6, %p57_p4  ;;  %p59_p5 = por %p58_p13, %p57_p4 }
  0x6c   : > { %s341_s30 = sand.u32 1, %s3971_s11   ;;  %s45_s12 = ssub.s32 %s3979_s13, %s4830_s22 }
  0x6d   : > { %p48_p7 = scmp.eq.s32.totalorder %s45_s12, 0  ;;  %s3119_s26 = sshll.u32 %s341_s30, 5 }
  0x6e   : > { %s3196_s16 = sshll.u32 %s3979_s13, 9  ;;  %s4807_s0 = sld [smem:[#allocation20_spill]] }
  0x6f   : > { %s4227_s20 = scalar_select %p48_p7, %s3971_s11, %s50_s18  }
  0x70   : > { %s345_s21 = scalar_lea.vmem [#allocation2], %s3119_s26  ;;  %p4238_p11 = pnand %p3593_p3, %p59_p5 }
  0x71   : > { %s353_s24 = sshll.u32 %s345_s21, 4  ;;  %s4245_s23 = scalar_lea.hbm %s4771_s1, %s3196_s16  ;;  %s4234_s24 = int_to_ptr.vmem [resolvable:$true] %s353_s24 }
  0x72   : > { %s367_s25 = scalar_lea.vmem [#allocation5], %s3119_s26  ;;  %s4249_s29 = scalar_lea.sflag [#allocation3], %s341_s30 }
  0x73   : > { %s4247_s28 = sshll.u32 %s367_s25, 4  ;;  %p3831_p12 = pneg %p4238_p11  ;;  %s4281_s28 = int_to_ptr.vmem [resolvable:$true] %s4247_s28 }
  0x74   : > { %s4232_s27 = scalar_lea.hbm %s4807_s0, %s3196_s16  ;;  %s3834_s18 = scalar_lea.hbm %s4807_s0, 1024 }
  0x75   : > { %s3829_s21 = scalar_lea.hbm %s4232_s27, 512  ;;  %p3835_p2 = scmp.lt.u32.totalorder %s4232_s27, %s4807_s0 }
  0x76   : > { %p3830_p9 = scmp.ne.s32.totalorder %s4232_s27, %s3829_s21  ;;  %p3836_p4 = scmp.lt.u32.totalorder %s3834_s18, %s3829_s21 }
  0x77   : > { %p3838_p13 = scmp.lt.u32.totalorder %s3829_s21, %s4232_s27 }
  0x78   : > { %p3832_p0 = pnand %p3831_p12, %p3830_p9  ;;  %p3837_p8 = por %p3836_p4, %p3835_p2 }
  0x7a   : > { %p3833_p1 = pneg %p3832_p0  ;;  %p3839_p6 = por %p3838_p13, %p3837_p8 }
  0x7c   : > { %p3840_p3 = pnand %p3839_p6, %p3833_p1 }
  0x7e   : > { %3843 = shalt.err (!%p3840_p3)
}
  0x7f   : > { %s3844_s30 = scalar_lea.vmem %s4234_s24, 512  ;;  %s3990_s2 = smov [#allocation2]  }
  0x80   : > { %p3845_p5 = scmp.ne.s32.totalorder %s4234_s24, %s3844_s30  ;;  %s3849_s3 = sshll.u32 %s3990_s2, 4  ;;  %s3850_s3 = int_to_ptr.vmem [resolvable:$false] %s3849_s3 }
  0x81   : > { %s3851_s26 = scalar_lea.vmem %s3850_s3, 1024  ;;  %p3852_p0 = scmp.lt.s32.totalorder %s4234_s24, %s3850_s3 }
  0x82   : > { %p3847_p7 = pnand %p3845_p5, %p3831_p12  ;;  %p3853_p2 = scmp.lt.s32.totalorder %s3851_s26, %s3844_s30 }
  0x84   : > { %p3848_p9 = pneg %p3847_p7  ;;  %p3854_p4 = por %p3853_p2, %p3852_p0 }
  0x86   : > { %p3855_p8 = pnand %p3854_p4, %p3848_p9 }
  0x88   : > { %3858 = shalt.err (!%p3855_p8)
}
  0x89   : > { %s4809_s25 = smov 4   ;;  %s4810_s21 = smov 64  }
  0x8a   : > { %3582 = dma.hbm_to_vmem [thread:$0]  (!%p4238_p11), %s4232_s27, 512, %s4234_s24, %s4249_s29, %s4810_s21, %s4810_s21, %s4809_s25  }
  0x8b   : > { %s363_s18 = sand.u32 1, %s3983_s14   ;;  %s3859_s16 = scalar_lea.hbm %s4245_s23, 512 }
  0x8c   : > { %s4284_s12 = scalar_lea.sflag [#allocation6], %s363_s18  ;;  %p3860_p1 = scmp.ne.s32.totalorder %s4245_s23, %s3859_s16 }
  0x8d   : > { %s3864_s3 = scalar_lea.hbm %s4771_s1, 1024  ;;  %p3865_p3 = scmp.lt.u32.totalorder %s4245_s23, %s4771_s1 }
  0x8e   : > { %p3862_p13 = pnand %p3860_p1, %p3831_p12  ;;  %p3866_p5 = scmp.lt.u32.totalorder %s3864_s3, %s3859_s16 }
  0x8f   : > { %p3868_p9 = scmp.lt.u32.totalorder %s3859_s16, %s4245_s23 }
  0x90   : > { %p3863_p6 = pneg %p3862_p13  ;;  %p3867_p7 = por %p3866_p5, %p3865_p3 }
  0x92   : > { %p3869_p0 = por %p3868_p9, %p3867_p7 }
  0x94   : > { %p3870_p2 = pnand %p3869_p0, %p3863_p6 }
  0x96   : > { %3873 = shalt.err (!%p3870_p2)
}
  0x97   : > { %s3874_s29 = scalar_lea.vmem %s4281_s28, 512  ;;  %s3991_s27 = smov [#allocation5]  }
  0x98   : > { %p3875_p4 = scmp.ne.s32.totalorder %s4281_s28, %s3874_s29  ;;  %s3879_s24 = sshll.u32 %s3991_s27, 4  ;;  %s3880_s24 = int_to_ptr.vmem [resolvable:$false] %s3879_s24 }
  0x99   : > { %s3881_s0 = scalar_lea.vmem %s3880_s24, 1024  ;;  %p3882_p13 = scmp.lt.s32.totalorder %s4281_s28, %s3880_s24 }
  0x9a   : > { %p3877_p8 = pnand %p3875_p4, %p3831_p12  ;;  %p3883_p3 = scmp.lt.s32.totalorder %s3881_s0, %s3874_s29 }
  0x9c   : > { %p3878_p1 = pneg %p3877_p8  ;;  %p3884_p5 = por %p3883_p3, %p3882_p13 }
  0x9e   : > { %p3885_p7 = pnand %p3884_p5, %p3878_p1 }
  0xa0   : > { %3888 = shalt.err (!%p3885_p7)
}
  0xa1   : > { %3585 = dma.hbm_to_vmem [thread:$0]  (!%p4238_p11), %s4245_s23, 512, %s4281_s28, %s4284_s12, %s4810_s21, %s4810_s21, %s4809_s25  }
  0xa2   : > { %p4811_p12 = scmp.ne.s32.totalorder %s4800_s19, 0 }
  0xa3   : > { %s4316_s18 = sand.u32 (!%p4811_p12), 1, %s3967_s10   ;;  %p4812_p6 = scmp.ne.s32.totalorder (!%p4811_p12), %s4797_s17, 0 }
  0xa4   : > { %387 = sbr.rel (%p4811_p12) target bundleno = 3894 (0xf36), region = 56  ;;  %s4319_s16 = sshll.u32 (!%p4811_p12), %s4316_s18, 5 }
  0xa5   : > { %s390_s8 = scalar_lea.sflag (!%p4811_p12), [#allocation3], %s4316_s18  ;;  %s4323_s30 = scalar_lea.vmem (!%p4811_p12), [#allocation2], %s4319_s16 }
  0xab   : > { %3942 = dma.done.wait (%p4812_p6), %s390_s8, 512  }
  0xac   : > { %3944 = vsyncadd (%p4812_p6), %s390_s8, 4294966784  ;;  %s398_s19 = sand.u32 1, %s4090_s15   ;;  %s402_s23 = scalar_lea.vmem [#allocation5], %s4319_s16 }
  0xad   : > { %s399_s28 = scalar_lea.sflag [#allocation6], %s398_s19 }
  0xae   : > { %3946 = dma.done.wait (%p4812_p6), %s399_s28, 512  }
  0xaf   : > { %3948 = vsyncadd (%p4812_p6), %s399_s28, 4294966784  ;;  %p4813_p11 = scmp.eq.s32.totalorder %s4090_s15, 0 }
  0xb1   : > { %3950 = dma.done.wait (%p4813_p11), [#allocation6], 256   ;;  %p4814_p9 = pmov %p4813_p11 }
  0xb3   : > { %3952 = vsyncadd (%p4814_p9), [#allocation6], 4294967040  ;;  %p4815_p0 = pmov %p4814_p9 }
  0xb5   : > { %3954 = dma.done.wait (%p4815_p0), [#allocation9], 512   ;;  %p4816_p2 = pmov %p4815_p0 }
  0xb6   : > { %v3992_v0 = vmov 1983009808   ;;  %v467_v2 = vlaneseq  ;;  %v3993_v5 = vmov 1934713408   ;;  %v3667_v7 = vld [vmem:[#allocation8] sm:$0xff]   ;;  %v3668_v8 = vld [vmem:[#allocation8 + $0x8] sm:$0xff]  }
  0xb7   : > { %3956 = vsyncadd (%p4816_p2), [#allocation9], 4294966784  ;;  %v465_v1 = vunpack.c.l.s4 %v3992_v0  ;;  %v498_v6 = vunpack.c.l.s4 %v3993_v5  ;;  %3291 = vmatprep.subr.bf16.mxu0 %v3667_v7  ;;  %v3669_v11 = vld [vmem:[%s402_s23] ss:$8 sps:$4 sm:$0xff]   ;;  %v3670_v12 = vld [vmem:[%s402_s23 + $0x4] ss:$8 sps:$4 sm:$0xff]  }
  0xb8   : > { %v468_v4 = vshrl.u32 %v467_v2, 7  ;;  %3292 = vmatpush3.bf16.msra.mxu0 %v3667_v7  ;;  %v3671_v13 = vld [vmem:[%s402_s23 + $0x10] ss:$8 sps:$4 sm:$0xff]   ;;  %v3672_v14 = vld [vmem:[%s402_s23 + $0x14] ss:$8 sps:$4 sm:$0xff]   ;;  %v3673_v16 = vld [vmem:[#allocation7] sm:$0xff]  }
  0xb9   : > { %v466_v3 = vunpack.c.0.s8 %v465_v1  ;;  %v499_v10 = vunpack.c.0.s8 %v498_v6  ;;  %3293 = vmatprep.subr.bf16.mxu0 %v3668_v8  ;;  %v3675_v25 = vld [vmem:[%s4323_s30] ss:$8 sps:$4 sm:$0xff]   ;;  %v3676_v30 = vld [vmem:[%s4323_s30 + $0x4] ss:$8 sps:$4 sm:$0xff]   ;;  %v3677_v31 = vld [vmem:[%s4323_s30 + $0x10] ss:$8 sps:$4 sm:$0xff]  }
  0xba   : > { %v3678_v32 = vld [vmem:[%s4323_s30 + $0x14] ss:$8 sps:$4 sm:$0xff]   ;;  %vm631_vm0 = vcmask 261120   ;;  %v3674_v43 = vld [vmem:[#allocation7 + $0x8] sm:$0xff]   ;;  %v3994_v58 = vmov 0.0   ;;  %vm3995_vm1 = vmmov 0  }
  0xbb   : > { %v4343_v9 = vsub.s32 %v466_v3, %v468_v4  ;;  %v4346_v17 = vsub.s32 %v499_v10, %v468_v4  ;;  %3307 = vmatprep.subr.bf16.mxu1 %v3994_v58  ;;  %v3140_v59 = vld [vmem:[%s4774_s4] ss:$0 sm:$0xff]  ;;  %3309 = vmatprep.mubr.msk.bf16.mxu1 %vm3995_vm1, %v3994_v58  ;;  %s3996_s25 = smov 96   ;;  %vm787_vm2 = vcmask 64512   ;;  %s3997_s21 = smov 64   ;;  %vm1031_vm3 = vcmask 1043456  }
  0xbc   : > { %3294 = vmatpush3.bf16.msra.mxu0 %v3668_v8  ;;  %s3998_s12 = smov 88   ;;  %s3999_s2 = smov 120   ;;  %vm2950_vm4 = vcmask 257024  }
  0xbd   : > { %v548_v15 = vrot.slane %v3669_v11, %v4343_v9  ;;  %v556_v18 = vrot.slane %v3670_v12, %v4343_v9  ;;  %v564_v19 = vrot.slane %v3671_v13, %v4343_v9  ;;  %v572_v20 = vrot.slane %v3672_v14, %v4343_v9  ;;  %3299 = vmatprep.subr.bf16.mxu0 %v3673_v16  ;;  %s4000_s3 = smov 56   ;;  %s4001_s26 = smov 112  }
  0xbe   : > { %v470_v33 = vrot.slane %v3675_v25, %v4343_v9  ;;  %v478_v38 = vrot.slane %v3676_v30, %v4343_v9  ;;  %v486_v39 = vrot.slane %v3677_v31, %v4343_v9  ;;  %v494_v40 = vrot.slane %v3678_v32, %v4343_v9  ;;  %s4002_s29 = smov 80   ;;  %s4003_s30 = smov 48  }
  0xbf   : > { %v573_v21 = vcombine.low %v548_v15, %v556_v18  ;;  %v574_v22 = vcombine.high %v548_v15, %v556_v18  ;;  %v589_v23 = vcombine.low %v564_v19, %v572_v20  ;;  %v590_v24 = vcombine.high %v564_v19, %v572_v20  ;;  %s4004_s19 = smov 72   ;;  %s4005_s28 = smov 104  }
  0xc0   : > { %v495_v44 = vcombine.low %v470_v33, %v478_v38  ;;  %v496_v45 = vcombine.high %v470_v33, %v478_v38  ;;  %v511_v46 = vcombine.low %v486_v39, %v494_v40  ;;  %v512_v47 = vcombine.high %v486_v39, %v494_v40  ;;  %s4006_s17 = smov 40   ;;  %s4817_s27 = sld [smem:[#allocation23_spill]] }
  0xc1   : > { %v581_v26 = vrot.slane %v573_v21, %v4346_v17  ;;  %v597_v27 = vrot.slane %v589_v23, %v4346_v17  ;;  %v588_v28 = vrot.slane %v574_v22, %v4346_v17  ;;  %v604_v29 = vrot.slane %v590_v24, %v4346_v17  ;;  %s4818_s24 = sld [smem:[#allocation18_spill]]  ;;  %s453_s8 = scalar_lea.vmem [#allocation11], %s4319_s16 }
  0xc2   : > { %v503_v48 = vrot.slane %v495_v44, %v4346_v17  ;;  %v519_v49 = vrot.slane %v511_v46, %v4346_v17  ;;  %v510_v50 = vrot.slane %v496_v45, %v4346_v17  ;;  %v526_v51 = vrot.slane %v512_v47, %v4346_v17  ;;  %s4819_s23 = sld [smem:[#allocation24_spill]]  ;;  %s2960_s16 = scalar_lea.sflag [#allocation4], %s4316_s18 }
  0xc3   : > { %v605_v34 = vcombine.low %v581_v26, %v597_v27  ;;  %v606_v35 = vcombine.high %v581_v26, %v597_v27  ;;  %v607_v36 = vcombine.low %v588_v28, %v604_v29  ;;  %v608_v37 = vcombine.high %v588_v28, %v604_v29 }
  0xc4   : > { %v527_v52 = vcombine.low %v503_v48, %v519_v49  ;;  %v528_v53 = vcombine.high %v503_v48, %v519_v49  ;;  %v529_v55 = vcombine.low %v510_v50, %v526_v51  ;;  %v530_v56 = vcombine.high %v510_v50, %v526_v51 }
  0xc5   : > { %v609_v41 = vpack.c.bf16 %v606_v35, %v605_v34  ;;  %v610_v42 = vpack.c.bf16 %v608_v37, %v607_v36 }
  0xc6   : > { %v531_v54 = vpack.c.bf16 %v528_v53, %v527_v52  ;;  %v532_v57 = vpack.c.bf16 %v530_v56, %v529_v55 }
  0xc7   : > { %3295 = vmatprep.mubr.msk.bf16.mxu0 %vm631_vm0, %v609_v41  ;;  %s3202_s0 = sshll.u32 %s4818_s24, 9 }
  0xc8   : > { %3296 = vmatmul.mubr.msk.bf16.vlgmr.msra.gmra.mrb[0].mxu0 %vm631_vm0, %v610_v42  ;;  %s4705_s15 = scalar_lea.hbm %s4819_s23, %s3202_s0 }
  0xc9   : > { %3300 = vmatpush3.bf16.msra.mxu0 %v3673_v16  ;;  %3303 = vmatprep.mubr.msk.bf16.mxu0 %vm631_vm0, %v531_v54 }
  0xca   : > { %3301 = vmatprep.subr.bf16.mxu0 %v3674_v43 }
  0xcd   : > { %3302 = vmatpush3.bf16.msra.mxu0 %v3674_v43 }
  0xce   : > { %3319 = vmatprep.subr.bf16.mxu0 %v3994_v58 }
  0xd4   : > { %3304 = vmatmul.mubr.msk.bf16.vlgmr.msra.gmra.mrb[0].mxu0 %vm631_vm0, %v532_v57 }
  0xd5   : > { %3321 = vmatprep.mubr.msk.bf16.mxu0 %vm3995_vm1, %v3994_v58 }
 0x1a7   : > { %v3305_v60 = vpop.f32.mrb[0].mxu0 }
 0x1a8   : > { %v763_v61 = vadd.f32 %v3305_v60, %v3140_v59  ;;  %v739_v62 = vpop.f32.mrb[1].mxu0 }
 0x1a9   : > { %v761_v63 = vadd.f32 %v3140_v59, %v739_v62  ;;  %v3306_v0 = vpop.f32.mrb[2].mxu0 }
 0x1aa   : > { %v767_v1 = vmax.f32 %v763_v61, 0.0  ;;  %v764_v2 = vadd.f32 %v3306_v0, %v3140_v59  ;;  %v742_v3 = vpop.f32.mrb[3].mxu0 }
 0x1ab   : > { %v765_v4 = vmax.f32 %v761_v63, 0.0  ;;  %v762_v5 = vadd.f32 %v3140_v59, %v742_v3 }
 0x1ac   : > { %v4380_v6 = vpack.c.bf16 %v767_v1, %v767_v1  ;;  %v768_v7 = vmax.f32 %v764_v2, 0.0 }
 0x1ad   : > { %v4382_v8 = vpack.c.bf16 %v765_v4, %v765_v4  ;;  %v766_v10 = vmax.f32 %v762_v5, 0.0 }
 0x1ae   : > { %882 = vrot.lane.b32.xlu1 %v4380_v6, %s3996_s25  ;;  %v4386_v11 = vpack.c.bf16 %v768_v7, %v768_v7 }
 0x1af   : > { %785 = vrot.lane.b32.xlu0 %v4382_v8, %s3996_s25  ;;  %v4388_v12 = vpack.c.bf16 %v766_v10, %v766_v10 }
 0x1b2   : > { %930 = vrot.lane.b32.xlu1 %v4386_v11, %s3996_s25 }
 0x1b3   : > { %834 = vrot.lane.b32.xlu0 %v4388_v12, %s3996_s25  ;;  %s4007_s25 = smov [#allocation11]  }
 0x220   : > { %v883_v13 = vpop.permute.xlu1 %882 }
 0x221   : > { %v888_v14 = vsel %vm787_vm2, %v883_v13, 0  ;;  %v786_v15 = vpop.permute.xlu0 %785 }
 0x222   : > { %3320 = vmatpush3.bf16.xpose.msra.mxu0 %v888_v14  ;;  %v792_v16 = vsel %vm787_vm2, %v786_v15, 0 }
 0x223   : > { %3308 = vmatpush3.bf16.xpose.msra.mxu1 %v792_v16  ;;  %3331 = vmatprep.subr.bf16.mxu0 %v3994_v58 }
 0x224   : > { %3313 = vmatprep.subr.bf16.mxu1 %v3994_v58  ;;  %v931_v20 = vpop.permute.xlu1 %930 }
 0x225   : > { %v835_v18 = vpop.permute.xlu0 %834  ;;  %v936_v21 = vsel %vm787_vm2, %v931_v20, 0 }
 0x226   : > { %v840_v19 = vsel %vm787_vm2, %v835_v18, 0 }
 0x229   : > { %3322 = vmatmul.mubr.msk.bf16.vlgmr.msra.gmra.mrb[4].mxu0 %vm787_vm2, %v4380_v6 }
 0x22a   : > { %3310 = vmatmul.mubr.msk.bf16.vlgmr.msra.gmra.mrb[0].mxu1 %vm787_vm2, %v4382_v8  ;;  %3333 = vmatprep.mubr.msk.bf16.mxu0 %vm3995_vm1, %v3994_v58 }
 0x22b   : > { %3314 = vmatpush3.bf16.xpose.msra.mxu1 %v840_v19  ;;  %3315 = vmatprep.mubr.msk.bf16.mxu1 %vm3995_vm1, %v3994_v58 }
 0x22c   : > { %3325 = vmatprep.subr.bf16.mxu1 %v3994_v58 }
 0x232   : > { %3316 = vmatmul.mubr.msk.bf16.vlgmr.msra.gmra.mrb[4].mxu1 %vm787_vm2, %v4388_v12 }
 0x233   : > { %3326 = vmatpush3.bf16.xpose.msra.mxu1 %v936_v21  ;;  %3327 = vmatprep.mubr.msk.bf16.mxu1 %vm3995_vm1, %v3994_v58 }
 0x234   : > { %3337 = vmatprep.subr.bf16.mxu1 %v3994_v58 }
 0x23a   : > { %3328 = vmatmul.mubr.msk.bf16.vlgmr.msra.gmra.mrb[8].mxu1 %vm787_vm2, %v4386_v11 }
 0x23b   : > { %3339 = vmatprep.mubr.msk.bf16.mxu1 %vm3995_vm1, %v3994_v58 }
 0x2fc   : > { %v924_v22 = vpop.f32.mrb[4].mxu0 }
 0x2fd   : > { %v828_v23 = vpop.f32.mrb[0].mxu1  ;;  %v3323_v24 = vpop.f32.mrb[5].mxu0  ;;  %v984_v31 = vsel %vm787_vm2, %v924_v22, -inf }
 0x2fe   : > { %v3311_v25 = vpop.f32.mrb[1].mxu1  ;;  %v927_v26 = vpop.f32.mrb[6].mxu0  ;;  %v978_v27 = vsel %vm787_vm2, %v828_v23, -inf }
 0x2ff   : > { %v831_v28 = vpop.f32.mrb[2].mxu1  ;;  %v3324_v29 = vpop.f32.mrb[7].mxu0  ;;  %979 = vmax.xlane.f32.xlu0 %v978_v27 }
 0x300   : > { %v3312_v30 = vpop.f32.mrb[3].mxu1 }
 0x303   : > { %985 = vmax.xlane.f32.xlu0 %v984_v31 }
 0x305   : > { %v876_v32 = vpop.f32.mrb[4].mxu1 }
 0x306   : > { %v3317_v33 = vpop.f32.mrb[5].mxu1  ;;  %v981_v34 = vsel %vm787_vm2, %v876_v32, -inf }
 0x307   : > { %982 = vmax.xlane.f32.xlu1 %v981_v34  ;;  %v879_v35 = vpop.f32.mrb[6].mxu1 }
 0x308   : > { %v3318_v36 = vpop.f32.mrb[7].mxu1 }
 0x30d   : > { %v972_v37 = vpop.f32.mrb[8].mxu1 }
 0x30e   : > { %v3329_v38 = vpop.f32.mrb[9].mxu1  ;;  %v987_v39 = vsel %vm787_vm2, %v972_v37, -inf }
 0x30f   : > { %988 = vmax.xlane.f32.xlu0 %v987_v39  ;;  %v975_v40 = vpop.f32.mrb[10].mxu1 }
 0x310   : > { %v3330_v41 = vpop.f32.mrb[11].mxu1 }
 0x318   : > { %1026 = vrot.lane.b32.xlu1 %v4382_v8, %s3997_s21 }
 0x38c   : > { %v980_v42 = vpop.xlane.xlu0 %979 }
 0x38d   : > { %v990_v43 = vsub.f32 %v828_v23, %v980_v42 }
 0x38f   : > { %v994_v46 = vmul.f32 1.442695, %v990_v43 }
 0x390   : > { %v986_v44 = vpop.xlane.xlu0 %985 }
 0x391   : > { %v992_v45 = vsub.f32 %v924_v22, %v986_v44 }
 0x393   : > { %v998_v47 = vmul.f32 1.442695, %v992_v45 }
 0x394   : > { %v983_v48 = vpop.xlane.xlu1 %982 }
 0x395   : > { %3681 = vpow2.f32 %v998_v47  ;;  %v991_v49 = vsub.f32 %v876_v32, %v983_v48 }
 0x396   : > { %3683 = vpow2.f32 %v994_v46 }
 0x397   : > { %v996_v50 = vmul.f32 1.442695, %v991_v49 }
 0x398   : > { %v1027_v51 = vpop.permute.xlu1 %1026 }
 0x399   : > { %3685 = vpow2.f32 %v996_v50  ;;  %v1033_v52 = vsel %vm1031_vm3, %v1027_v51, 0 }
 0x39a   : > { %3332 = vmatpush3.bf16.msra.mxu0 %v1033_v52 }
 0x39b   : > { %3343 = vmatprep.subr.bf16.mxu0 %v3994_v58 }
 0x39c   : > { %v989_v60 = vpop.xlane.xlu0 %988 }
 0x39d   : > { %v993_v61 = vsub.f32 %v972_v37, %v989_v60 }
 0x39f   : > { %v3682_v53 = vpop.eup %3681  ;;  %v1000_v62 = vmul.f32 1.442695, %v993_v61 }
 0x3a0   : > { %v1008_v54 = vsel %vm787_vm2, %v3682_v53, 0.0  ;;  %v3684_v55 = vpop.eup %3683 }
 0x3a1   : > { %1009 = vadd.xlane.f32.xlu1 %v1008_v54  ;;  %v1002_v59 = vsel %vm787_vm2, %v3684_v55, 0.0  ;;  %3687 = vpow2.f32 %v1000_v62 }
 0x3a3   : > { %v3686_v56 = vpop.eup %3685 }
 0x3a4   : > { %v1005_v57 = vsel %vm787_vm2, %v3686_v56, 0.0 }
 0x3a5   : > { %1006 = vadd.xlane.f32.xlu0 %v1005_v57  ;;  %1003 = vadd.xlane.f32.xlu1 %v1002_v59 }
 0x3ab   : > { %v3688_v63 = vpop.eup %3687 }
 0x3ac   : > { %v1011_v0 = vsel %vm787_vm2, %v3688_v63, 0.0 }
 0x3b6   : > { %1123 = vrot.lane.b32.xlu1 %v4380_v6, %s3997_s21 }
 0x3ba   : > { %1171 = vrot.lane.b32.xlu1 %v4386_v11, %s3997_s21 }
 0x3bb   : > { %1075 = vrot.lane.b32.xlu0 %v4388_v12, %s3997_s21 }
 0x3be   : > { %1273 = vrot.lane.b32.xlu1 %v4388_v12, %s3998_s12 }
 0x3c2   : > { %1271 = vrot.lane.b32.xlu1 %v4388_v12, %s3999_s2 }
 0x3c6   : > { %1373 = vrot.lane.b32.xlu1 %v4386_v11, %s3998_s12 }
 0x3ca   : > { %1371 = vrot.lane.b32.xlu1 %v4386_v11, %s3999_s2 }
 0x3da   : > { %1012 = vadd.xlane.f32.xlu0 %v1011_v0 }
 0x3f0   : > { %1223 = vrot.lane.b32.xlu0 %v4382_v8, %s3998_s12 }
 0x3f4   : > { %1221 = vrot.lane.b32.xlu0 %v4382_v8, %s3999_s2 }
 0x3f8   : > { %1323 = vrot.lane.b32.xlu0 %v4380_v6, %s3998_s12  ;;  %s3893_s12 = sshll.u32 %s4007_s25, 4  ;;  %s3894_s12 = int_to_ptr.vmem [resolvable:$false] %s3893_s12 }
 0x3fc   : > { %1321 = vrot.lane.b32.xlu0 %v4380_v6, %s3999_s2  ;;  %s3895_s2 = scalar_lea.vmem %s3894_s12, 1024 }
 0x42e   : > { %v1010_v1 = vpop.xlane.xlu1 %1009 }
 0x432   : > { %v1004_v2 = vpop.xlane.xlu1 %1003  ;;  %v1007_v3 = vpop.xlane.xlu0 %1006 }
 0x433   : > { %3689 = vrcp.f32 %v1004_v2 }
 0x434   : > { %3691 = vrcp.f32 %v1007_v3 }
 0x435   : > { %3693 = vrcp.f32 %v1010_v1 }
 0x436   : > { %v1076_v4 = vpop.permute.xlu0 %1075  ;;  %v1124_v7 = vpop.permute.xlu1 %1123 }
 0x437   : > { %v1081_v5 = vsel %vm1031_vm3, %v1076_v4, 0  ;;  %v1129_v21 = vsel %vm1031_vm3, %v1124_v7, 0 }
 0x438   : > { %3338 = vmatpush3.bf16.msra.mxu1 %v1081_v5 }
 0x439   : > { %3349 = vmatprep.subr.bf16.mxu1 %v3994_v58 }
 0x43a   : > { %v1172_v16 = vpop.permute.xlu1 %1171 }
 0x43b   : > { %v1177_v22 = vsel %vm1031_vm3, %v1172_v16, 0 }
 0x43d   : > { %v3690_v10 = vpop.eup %3689 }
 0x43e   : > { %v3692_v13 = vpop.eup %3691  ;;  %v1018_v14 = vmul.f32 %v3690_v10, %v3684_v55  ;;  %v1274_v29 = vpop.permute.xlu1 %1273 }
 0x43f   : > { %v1019_v15 = vmul.f32 %v3692_v13, %v3686_v56  ;;  %v3694_v19 = vpop.eup %3693  ;;  %v1279_v36 = vsel %vm787_vm2, %v1274_v29, 0 }
 0x440   : > { %v1022_v18 = vpack.c.bf16 %v1018_v14, %v1018_v14  ;;  %v1020_v23 = vmul.f32 %v3694_v19, %v3682_v53 }
 0x441   : > { %v1023_v20 = vpack.c.bf16 %v1019_v15, %v1019_v15 }
 0x442   : > { %3334 = vmatmul.mubr.msk.bf16.vlgmr.msra.gmra.mrb[8].mxu0 %vm787_vm2, %v1022_v18  ;;  %v1024_v24 = vpack.c.bf16 %v1020_v23, %v1020_v23  ;;  %v1272_v35 = vpop.permute.xlu1 %1271 }
 0x443   : > { %3344 = vmatpush3.bf16.msra.mxu0 %v1129_v21  ;;  %3340 = vmatmul.mubr.msk.bf16.vlgmr.msra.gmra.mrb[12].mxu1 %vm787_vm2, %v1023_v20 }
 0x444   : > { %3350 = vmatpush3.bf16.msra.mxu1 %v1177_v22  ;;  %3345 = vmatprep.mubr.msk.bf16.mxu0 %vm3995_vm1, %v3994_v58 }
 0x445   : > { %3355 = vmatprep.subr.bf16.mxu0 %v3994_v58  ;;  %3351 = vmatprep.mubr.msk.bf16.mxu1 %vm3995_vm1, %v3994_v58 }
 0x446   : > { %3361 = vmatprep.subr.bf16.mxu1 %v3994_v58  ;;  %v1374_v38 = vpop.permute.xlu1 %1373 }
 0x447   : > { %v1379_v39 = vsel %vm787_vm2, %v1374_v38, 0 }
 0x44a   : > { %3346 = vmatmul.mubr.msk.bf16.vlgmr.msra.gmra.mrb[12].mxu0 %vm787_vm2, %v1024_v24  ;;  %v1372_v40 = vpop.permute.xlu1 %1371 }
 0x44b   : > { %3357 = vmatprep.mubr.msk.bf16.mxu0 %vm3995_vm1, %v3994_v58 }
 0x467   : > { %v1013_v25 = vpop.xlane.xlu0 %1012 }
 0x468   : > { %3695 = vrcp.f32 %v1013_v25 }
 0x46b   : > { %v1224_v26 = vpop.permute.xlu0 %1223 }
 0x46c   : > { %v1229_v27 = vsel %vm787_vm2, %v1224_v26, 0 }
 0x46d   : > { %3356 = vmatpush3.bf16.xpose.msra.mxu0 %v1229_v27 }
 0x46e   : > { %3367 = vmatprep.subr.bf16.mxu0 %v3994_v58 }
 0x46f   : > { %v1222_v28 = vpop.permute.xlu0 %1221 }
 0x472   : > { %v3696_v30 = vpop.eup %3695 }
 0x473   : > { %v1021_v31 = vmul.f32 %v3696_v30, %v3688_v63  ;;  %v1324_v32 = vpop.permute.xlu0 %1323 }
 0x474   : > { %v1329_v33 = vsel %vm787_vm2, %v1324_v32, 0  ;;  %3358 = vmatmul.mubr.msk.bf16.vlgmr.msra.gmra.mrb[16].mxu0 %vm787_vm2, %v1222_v28 }
 0x475   : > { %3368 = vmatpush3.bf16.xpose.msra.mxu0 %v1329_v33  ;;  %v1025_v34 = vpack.c.bf16 %v1021_v31, %v1021_v31  ;;  %3369 = vmatprep.mubr.msk.bf16.mxu0 %vm3995_vm1, %v3994_v58 }
 0x476   : > { %3379 = vmatprep.subr.bf16.mxu0 %v3994_v58 }
 0x477   : > { %3352 = vmatmul.mubr.msk.bf16.vlgmr.msra.gmra.mrb[16].mxu1 %vm787_vm2, %v1025_v34  ;;  %v1322_v37 = vpop.permute.xlu0 %1321 }
 0x478   : > { %3362 = vmatpush3.bf16.xpose.msra.mxu1 %v1279_v36  ;;  %3363 = vmatprep.mubr.msk.bf16.mxu1 %vm3995_vm1, %v3994_v58 }
 0x479   : > { %3373 = vmatprep.subr.bf16.mxu1 %v3994_v58 }
 0x47c   : > { %3370 = vmatmul.mubr.msk.bf16.vlgmr.msra.gmra.mrb[20].mxu0 %vm787_vm2, %v1322_v37 }
 0x47d   : > { %3381 = vmatprep.mubr.msk.bf16.mxu0 %vm3995_vm1, %v3994_v58 }
 0x47f   : > { %3364 = vmatmul.mubr.msk.bf16.vlgmr.msra.gmra.mrb[20].mxu1 %vm787_vm2, %v1272_v35 }
 0x480   : > { %3374 = vmatpush3.bf16.xpose.msra.mxu1 %v1379_v39  ;;  %3375 = vmatprep.mubr.msk.bf16.mxu1 %vm3995_vm1, %v3994_v58 }
 0x481   : > { %3385 = vmatprep.subr.bf16.mxu1 %v3994_v58 }
 0x487   : > { %3376 = vmatmul.mubr.msk.bf16.vlgmr.msra.gmra.mrb[24].mxu1 %vm787_vm2, %v1372_v40 }
 0x488   : > { %3387 = vmatprep.mubr.msk.bf16.mxu1 %vm3995_vm1, %v3994_v58 }
 0x515   : > { %v4480_v41 = vpop.f32.mrb[8].mxu0 }
 0x516   : > { %v4482_v42 = vpop.f32.mrb[12].mxu1  ;;  %v3335_v43 = vpop.f32.mrb[9].mxu0 }
 0x517   : > { %v1219_v44 = vpack.c.bf16 %v4482_v42, %v4480_v41  ;;  %v3341_v45 = vpop.f32.mrb[13].mxu1  ;;  %v1072_v46 = vpop.f32.mrb[10].mxu0 }
 0x518   : > { %v1120_v47 = vpop.f32.mrb[14].mxu1  ;;  %v3336_v48 = vpop.f32.mrb[11].mxu0 }
 0x519   : > { %v3342_v49 = vpop.f32.mrb[15].mxu1 }
 0x51d   : > { %v4486_v50 = vpop.f32.mrb[12].mxu0 }
 0x51e   : > { %v3347_v51 = vpop.f32.mrb[13].mxu0 }
 0x51f   : > { %v1168_v52 = vpop.f32.mrb[14].mxu0 }
 0x520   : > { %v3348_v53 = vpop.f32.mrb[15].mxu0 }
 0x547   : > { %v1265_v54 = vpop.f32.mrb[16].mxu0 }
 0x548   : > { %v3359_v55 = vpop.f32.mrb[17].mxu0  ;;  %v1421_v56 = vsel %vm787_vm2, %v1265_v54, -inf }
 0x549   : > { %1422 = vmax.xlane.f32.xlu0 %v1421_v56  ;;  %v1268_v57 = vpop.f32.mrb[18].mxu0 }
 0x54a   : > { %v4489_v59 = vpop.f32.mrb[16].mxu1  ;;  %v3360_v60 = vpop.f32.mrb[19].mxu0 }
 0x54b   : > { %v1220_v61 = vpack.c.bf16 %v4489_v59, %v4486_v50  ;;  %v3353_v62 = vpop.f32.mrb[17].mxu1 }
 0x54c   : > { %v1216_v63 = vpop.f32.mrb[18].mxu1 }
 0x54d   : > { %v3354_v0 = vpop.f32.mrb[19].mxu1 }
 0x54f   : > { %v1365_v1 = vpop.f32.mrb[20].mxu0 }
 0x550   : > { %v3371_v2 = vpop.f32.mrb[21].mxu0  ;;  %v1427_v3 = vsel %vm787_vm2, %v1365_v1, -inf }
 0x551   : > { %1428 = vmax.xlane.f32.xlu0 %v1427_v3  ;;  %v1368_v4 = vpop.f32.mrb[22].mxu0 }
 0x552   : > { %v1315_v5 = vpop.f32.mrb[20].mxu1  ;;  %v3372_v7 = vpop.f32.mrb[23].mxu0 }
 0x553   : > { %v3365_v10 = vpop.f32.mrb[21].mxu1  ;;  %v1424_v13 = vsel %vm787_vm2, %v1315_v5, -inf }
 0x554   : > { %1425 = vmax.xlane.f32.xlu1 %v1424_v13  ;;  %v1318_v14 = vpop.f32.mrb[22].mxu1 }
 0x555   : > { %v3366_v15 = vpop.f32.mrb[23].mxu1 }
 0x55a   : > { %v1415_v16 = vpop.f32.mrb[24].mxu1 }
 0x55b   : > { %v3377_v18 = vpop.f32.mrb[25].mxu1  ;;  %v1430_v19 = vsel %vm787_vm2, %v1415_v16, -inf }
 0x55c   : > { %v1418_v20 = vpop.f32.mrb[26].mxu1  ;;  %1431 = vmax.xlane.f32.xlu0 %v1430_v19 }
 0x55d   : > { %v3378_v21 = vpop.f32.mrb[27].mxu1 }
 0x565   : > { %1469 = vrot.lane.b32.xlu1 %v4382_v8, %s4000_s3 }
 0x5d6   : > { %v1423_v22 = vpop.xlane.xlu0 %1422 }
 0x5d7   : > { %v1433_v23 = vsub.f32 %v1265_v54, %v1423_v22 }
 0x5d9   : > { %v1437_v24 = vmul.f32 1.442695, %v1433_v23 }
 0x5db   : > { %3697 = vpow2.f32 %v1437_v24  ;;  %v772_v24 = vld [vmem:[%s4775_s5 + $0x4] sm:$0xf] }
 0x5de   : > { %v1429_v25 = vpop.xlane.xlu0 %1428 }
 0x5df   : > { %v1435_v26 = vsub.f32 %v1365_v1, %v1429_v25  ;;  %v1670_v25 = vsel %vm1031_vm3, %v772_v24, 0 }
 0x5e1   : > { %v1441_v27 = vmul.f32 1.442695, %v1435_v26  ;;  %v1426_v28 = vpop.xlane.xlu1 %1425  ;;  %v771_v26 = vld [vmem:[%s4775_s5] sm:$0xf] }
 0x5e2   : > { %v1434_v29 = vsub.f32 %v1315_v5, %v1426_v28 }
 0x5e3   : > { %3699 = vpow2.f32 %v1441_v27 }
 0x5e4   : > { %v1439_v30 = vmul.f32 1.442695, %v1434_v29 }
 0x5e5   : > { %v3698_v31 = vpop.eup %3697  ;;  %v1470_v32 = vpop.permute.xlu1 %1469 }
 0x5e6   : > { %3701 = vpow2.f32 %v1439_v30  ;;  %v1475_v33 = vsel %vm1031_vm3, %v1470_v32, 0  ;;  %v1445_v34 = vsel %vm787_vm2, %v3698_v31, 0.0 }
 0x5e7   : > { %3380 = vmatpush3.bf16.msra.mxu0 %v1475_v33  ;;  %1446 = vadd.xlane.f32.xlu1 %v1445_v34 }
 0x5e8   : > { %3391 = vmatprep.subr.bf16.mxu0 %v3994_v58 }
 0x5e9   : > { %v1432_v35 = vpop.xlane.xlu0 %1431 }
 0x5ea   : > { %v1436_v36 = vsub.f32 %v1415_v16, %v1432_v35 }
 0x5ec   : > { %v1443_v37 = vmul.f32 1.442695, %v1436_v36 }
 0x5ed   : > { %v3700_v38 = vpop.eup %3699 }
 0x5ee   : > { %3703 = vpow2.f32 %v1443_v37  ;;  %v1451_v39 = vsel %vm787_vm2, %v3700_v38, 0.0 }
 0x5ef   : > { %1452 = vadd.xlane.f32.xlu1 %v1451_v39 }
 0x5f0   : > { %v3702_v40 = vpop.eup %3701 }
 0x5f1   : > { %v1448_v43 = vsel %vm787_vm2, %v3702_v40, 0.0 }
 0x5f2   : > { %1449 = vadd.xlane.f32.xlu0 %v1448_v43 }
 0x5f8   : > { %v3704_v45 = vpop.eup %3703 }
 0x5f9   : > { %v1454_v46 = vsel %vm787_vm2, %v3704_v45, 0.0 }
 0x5fa   : > { %1455 = vadd.xlane.f32.xlu0 %v1454_v46  ;;  %v1728_v46 = vsel %vm1031_vm3, %v771_v26, 0 }
 0x600   : > { %1565 = vrot.lane.b32.xlu1 %v4380_v6, %s4000_s3 }
 0x604   : > { %1613 = vrot.lane.b32.xlu1 %v4386_v11, %s4000_s3 }
 0x608   : > { %1779 = vrot.lane.b32.xlu1 %v4382_v8, %s4001_s26 }
 0x60c   : > { %1829 = vrot.lane.b32.xlu1 %v4388_v12, %s4001_s26 }
 0x610   : > { %1931 = vrot.lane.b32.xlu1 %v4386_v11, %s4002_s29  ;;  %1517 = vrot.lane.b32.xlu0 %v4388_v12, %s4000_s3 }
 0x614   : > { %1929 = vrot.lane.b32.xlu1 %v4386_v11, %s4001_s26  ;;  %1781 = vrot.lane.b32.xlu0 %v4382_v8, %s4002_s29 }
 0x618   : > { %1831 = vrot.lane.b32.xlu0 %v4388_v12, %s4002_s29 }
 0x61c   : > { %1881 = vrot.lane.b32.xlu0 %v4380_v6, %s4002_s29 }
 0x620   : > { %1879 = vrot.lane.b32.xlu0 %v4380_v6, %s4001_s26 }
 0x674   : > { %v1447_v47 = vpop.xlane.xlu1 %1446 }
 0x675   : > { %3705 = vrcp.f32 %v1447_v47 }
 0x67c   : > { %v1453_v48 = vpop.xlane.xlu1 %1452 }
 0x67d   : > { %3707 = vrcp.f32 %v1453_v48 }
 0x67f   : > { %v3706_v49 = vpop.eup %3705  ;;  %v1450_v51 = vpop.xlane.xlu0 %1449 }
 0x680   : > { %v1461_v52 = vmul.f32 %v3706_v49, %v3698_v31  ;;  %3709 = vrcp.f32 %v1450_v51  ;;  %v1566_v53 = vpop.permute.xlu1 %1565 }
 0x681   : > { %v1571_v55 = vsel %vm1031_vm3, %v1566_v53, 0 }
 0x682   : > { %v1465_v54 = vpack.c.bf16 %v1461_v52, %v1461_v52 }
 0x684   : > { %3382 = vmatmul.mubr.msk.bf16.vlgmr.msra.gmra.mrb[24].mxu0 %vm787_vm2, %v1465_v54  ;;  %v1614_v3 = vpop.permute.xlu1 %1613 }
 0x685   : > { %3392 = vmatpush3.bf16.msra.mxu0 %v1571_v55  ;;  %3393 = vmatprep.mubr.msk.bf16.mxu0 %vm3995_vm1, %v3994_v58  ;;  %v1619_v5 = vsel %vm1031_vm3, %v1614_v3, 0 }
 0x686   : > { %3547 = vmatprep.subr.msk.bf16.mxu0 %vm1031_vm3, %v772_v24 }
 0x687   : > { %v3708_v56 = vpop.eup %3707  ;;  %v1456_v57 = vpop.xlane.xlu0 %1455 }
 0x688   : > { %v1463_v60 = vmul.f32 %v3708_v56, %v3700_v38  ;;  %3711 = vrcp.f32 %v1456_v57  ;;  %v1780_v16 = vpop.permute.xlu1 %1779 }
 0x68a   : > { %v3710_v62 = vpop.eup %3709  ;;  %v1467_v63 = vpack.c.bf16 %v1463_v60, %v1463_v60 }
 0x68b   : > { %v1462_v0 = vmul.f32 %v3710_v62, %v3702_v40  ;;  %v1518_v1 = vpop.permute.xlu0 %1517 }
 0x68c   : > { %v1523_v2 = vsel %vm1031_vm3, %v1518_v1, 0  ;;  %3394 = vmatmul.mubr.msk.bf16.vlgmr.msra.gmra.mrb[28].mxu0 %vm787_vm2, %v1467_v63  ;;  %v1830_v19 = vpop.permute.xlu1 %1829 }
 0x68d   : > { %3386 = vmatpush3.bf16.msra.mxu1 %v1523_v2  ;;  %v1466_v4 = vpack.c.bf16 %v1462_v0, %v1462_v0  ;;  %3404 = vmatpush3.bf16.msra.mxu0 %v1670_v25 }
 0x68e   : > { %3397 = vmatprep.subr.bf16.mxu1 %v3994_v58  ;;  %3548 = vmatprep.subr.msk.bf16.mxu0 %vm1031_vm3, %v771_v26 }
 0x68f   : > { %v1782_v14 = vpop.permute.xlu0 %1781 }
 0x690   : > { %3388 = vmatmul.mubr.msk.bf16.vlgmr.msra.gmra.mrb[28].mxu1 %vm787_vm2, %v1466_v4  ;;  %v1787_v15 = vsel %vm787_vm2, %v1782_v14, 0  ;;  %v1932_v21 = vpop.permute.xlu1 %1931 }
 0x691   : > { %3398 = vmatpush3.bf16.msra.mxu1 %v1619_v5  ;;  %3399 = vmatprep.mubr.msk.bf16.mxu1 %vm3995_vm1, %v3994_v58  ;;  %v1937_v22 = vsel %vm787_vm2, %v1932_v21, 0 }
 0x692   : > { %v3712_v7 = vpop.eup %3711  ;;  %3415 = vmatprep.subr.bf16.mxu1 %v3994_v58 }
 0x693   : > { %v1464_v10 = vmul.f32 %v3712_v7, %v3704_v45  ;;  %v1832_v18 = vpop.permute.xlu0 %1831 }
 0x694   : > { %v1837_v20 = vsel %vm787_vm2, %v1832_v18, 0  ;;  %v1930_v23 = vpop.permute.xlu1 %1929 }
 0x695   : > { %v1468_v13 = vpack.c.bf16 %v1464_v10, %v1464_v10 }
 0x697   : > { %v1882_v54 = vpop.permute.xlu0 %1881 }
 0x698   : > { %3400 = vmatmul.mubr.msk.bf16.vlgmr.msra.gmra.mrb[32].mxu1 %vm787_vm2, %v1468_v13  ;;  %v1887_v56 = vsel %vm787_vm2, %v1882_v54, 0 }
 0x699   : > { %3417 = vmatprep.mubr.msk.bf16.mxu1 %vm3995_vm1, %v3994_v58 }
 0x69a   : > { %3416 = vmatpush3.bf16.xpose.msra.mxu1 %v1787_v15 }
 0x69b   : > { %3421 = vmatprep.subr.bf16.mxu1 %v3994_v58  ;;  %v1880_v62 = vpop.permute.xlu0 %1879 }
 0x6a1   : > { %3418 = vmatmul.mubr.msk.bf16.vlgmr.msra.gmra.mrb[36].mxu1 %vm787_vm2, %v1780_v16 }
 0x6a2   : > { %3422 = vmatpush3.bf16.xpose.msra.mxu1 %v1837_v20  ;;  %3423 = vmatprep.mubr.msk.bf16.mxu1 %vm3995_vm1, %v3994_v58 }
 0x6a3   : > { %3433 = vmatprep.subr.bf16.mxu1 %v3994_v58 }
 0x6a9   : > { %3424 = vmatmul.mubr.msk.bf16.vlgmr.msra.gmra.mrb[40].mxu1 %vm787_vm2, %v1830_v19 }
 0x6aa   : > { %3434 = vmatpush3.bf16.xpose.msra.mxu1 %v1937_v22  ;;  %3435 = vmatprep.mubr.msk.bf16.mxu1 %vm3995_vm1, %v3994_v58 }
 0x6ab   : > { %3445 = vmatprep.subr.bf16.mxu1 %v3994_v58 }
 0x6b1   : > { %3436 = vmatmul.mubr.msk.bf16.vlgmr.msra.gmra.mrb[44].mxu1 %vm787_vm2, %v1930_v23 }
 0x6b2   : > { %3447 = vmatprep.mubr.msk.bf16.mxu1 %vm3995_vm1, %v3994_v58 }
 0x757   : > { %v1511_v27 = vpop.f32.mrb[24].mxu0 }
 0x758   : > { %v3383_v28 = vpop.f32.mrb[25].mxu0 }
 0x759   : > { %v1514_v29 = vpop.f32.mrb[26].mxu0 }
 0x75a   : > { %v3384_v30 = vpop.f32.mrb[27].mxu0 }
 0x75f   : > { %v1607_v31 = vpop.f32.mrb[28].mxu0 }
 0x760   : > { %v3395_v32 = vpop.f32.mrb[29].mxu0 }
 0x761   : > { %v1610_v33 = vpop.f32.mrb[30].mxu0 }
 0x762   : > { %v3396_v34 = vpop.f32.mrb[31].mxu0 }
 0x763   : > { %v1559_v35 = vpop.f32.mrb[28].mxu1 }
 0x764   : > { %v1661_v36 = vpack.c.bf16 %v1559_v35, %v1511_v27  ;;  %v3389_v37 = vpop.f32.mrb[29].mxu1 }
 0x765   : > { %v1562_v38 = vpop.f32.mrb[30].mxu1 }
 0x766   : > { %v3390_v39 = vpop.f32.mrb[31].mxu1  ;;  %3405 = vmatprep.mubr.msk.bf16.mxu0 %vm787_vm2, %v1661_v36 }
 0x76b   : > { %v1655_v40 = vpop.f32.mrb[32].mxu1 }
 0x76c   : > { %v1662_v43 = vpack.c.bf16 %v1655_v40, %v1607_v31  ;;  %v3401_v45 = vpop.f32.mrb[33].mxu1 }
 0x76d   : > { %v1658_v47 = vpop.f32.mrb[34].mxu1 }
 0x76e   : > { %v3402_v48 = vpop.f32.mrb[35].mxu1  ;;  %3406 = vmatmul.mubr.msk.bf16.vlgmr.msra.gmra.mrb[32].mxu0 %vm787_vm2, %v1662_v43 }
 0x76f   : > { %3411 = vmatprep.mubr.msk.bf16.mxu0 %vm787_vm2, %v1219_v44  ;;  %3410 = vmatpush3.bf16.msra.mxu0 %v1728_v46 }
 0x770   : > { %3427 = vmatprep.subr.bf16.mxu0 %v3994_v58 }
 0x774   : > { %v1823_v49 = vpop.f32.mrb[36].mxu1 }
 0x775   : > { %v3419_v51 = vpop.f32.mrb[37].mxu1  ;;  %v1979_v52 = vsel %vm787_vm2, %v1823_v49, -inf }
 0x776   : > { %1980 = vmax.xlane.f32.xlu0 %v1979_v52  ;;  %v1826_v53 = vpop.f32.mrb[38].mxu1 }
 0x777   : > { %v3420_v55 = vpop.f32.mrb[39].mxu1 }
 0x77a   : > { %3412 = vmatmul.mubr.msk.bf16.vlgmr.msra.gmra.mrb[32].mxu0 %vm787_vm2, %v1220_v61 }
 0x77b   : > { %3428 = vmatpush3.bf16.xpose.msra.mxu0 %v1887_v56  ;;  %3429 = vmatprep.mubr.msk.bf16.mxu0 %vm3995_vm1, %v3994_v58 }
 0x77c   : > { %v1873_v41 = vpop.f32.mrb[40].mxu1  ;;  %3439 = vmatprep.subr.bf16.mxu0 %v3994_v58 }
 0x77d   : > { %v3425_v42 = vpop.f32.mrb[41].mxu1  ;;  %v1982_v44 = vsel %vm787_vm2, %v1873_v41, -inf }
 0x77e   : > { %1983 = vmax.xlane.f32.xlu1 %v1982_v44  ;;  %v1876_v57 = vpop.f32.mrb[42].mxu1 }
 0x77f   : > { %v3426_v60 = vpop.f32.mrb[43].mxu1 }
 0x782   : > { %3430 = vmatmul.mubr.msk.bf16.vlgmr.msra.gmra.mrb[36].mxu0 %vm787_vm2, %v1880_v62 }
 0x783   : > { %3441 = vmatprep.mubr.msk.bf16.mxu0 %vm3995_vm1, %v3994_v58 }
 0x784   : > { %v1973_v50 = vpop.f32.mrb[44].mxu1 }
 0x785   : > { %v3437_v59 = vpop.f32.mrb[45].mxu1  ;;  %v1988_v19 = vsel %vm787_vm2, %v1973_v50, -inf }
 0x786   : > { %v1976_v61 = vpop.f32.mrb[46].mxu1 }
 0x787   : > { %v3438_v63 = vpop.f32.mrb[47].mxu1 }
 0x803   : > { %v1981_v0 = vpop.xlane.xlu0 %1980 }
 0x804   : > { %v1991_v1 = vsub.f32 %v1823_v49, %v1981_v0 }
 0x806   : > { %v1995_v2 = vmul.f32 1.442695, %v1991_v1 }
 0x808   : > { %3713 = vpow2.f32 %v1995_v2 }
 0x80b   : > { %v1984_v5 = vpop.xlane.xlu1 %1983 }
 0x80c   : > { %v1992_v7 = vsub.f32 %v1873_v41, %v1984_v5 }
 0x80e   : > { %v1997_v10 = vmul.f32 1.442695, %v1992_v7 }
 0x810   : > { %3715 = vpow2.f32 %v1997_v10 }
 0x812   : > { %v3714_v3 = vpop.eup %3713 }
 0x813   : > { %v2003_v4 = vsel %vm787_vm2, %v3714_v3, 0.0 }
 0x814   : > { %2004 = vadd.xlane.f32.xlu1 %v2003_v4 }
 0x81a   : > { %v3716_v20 = vpop.eup %3715 }
 0x81b   : > { %v2006_v21 = vsel %vm787_vm2, %v3716_v20, 0.0 }
 0x825   : > { %2027 = vrot.lane.b32.xlu1 %v4382_v8, %s4003_s30 }
 0x829   : > { %2123 = vrot.lane.b32.xlu1 %v4380_v6, %s4003_s30 }
 0x855   : > { %v1923_v13 = vpop.f32.mrb[36].mxu0 }
 0x856   : > { %v3431_v14 = vpop.f32.mrb[37].mxu0  ;;  %v1985_v15 = vsel %vm787_vm2, %v1923_v13, -inf }
 0x857   : > { %1986 = vmax.xlane.f32.xlu0 %v1985_v15  ;;  %v1926_v16 = vpop.f32.mrb[38].mxu0 }
 0x858   : > { %v3432_v18 = vpop.f32.mrb[39].mxu0 }
 0x85b   : > { %1989 = vmax.xlane.f32.xlu0 %v1988_v19 }
 0x85f   : > { %2007 = vadd.xlane.f32.xlu0 %v2006_v21 }
 0x8a1   : > { %v2005_v22 = vpop.xlane.xlu1 %2004 }
 0x8a2   : > { %3717 = vrcp.f32 %v2005_v22 }
 0x8a5   : > { %v2028_v23 = vpop.permute.xlu1 %2027 }
 0x8a6   : > { %v2033_v24 = vsel %vm1031_vm3, %v2028_v23, 0 }
 0x8a7   : > { %3440 = vmatpush3.bf16.msra.mxu0 %v2033_v24 }
 0x8a8   : > { %3451 = vmatprep.subr.bf16.mxu0 %v3994_v58 }
 0x8a9   : > { %v2124_v27 = vpop.permute.xlu1 %2123 }
 0x8aa   : > { %v2129_v29 = vsel %vm1031_vm3, %v2124_v27, 0 }
 0x8ac   : > { %v3718_v25 = vpop.eup %3717 }
 0x8ad   : > { %v2019_v26 = vmul.f32 %v3718_v25, %v3714_v3  ;;  %v773_v3 = vld [vmem:[%s4775_s5 + $0x8] sm:$0xf] }
 0x8ae   : > { %v2228_v4 = vsel %vm1031_vm3, %v773_v3, 0 }
 0x8af   : > { %v2023_v28 = vpack.c.bf16 %v2019_v26, %v2019_v26 }
 0x8b1   : > { %3442 = vmatmul.mubr.msk.bf16.vlgmr.msra.gmra.mrb[40].mxu0 %vm787_vm2, %v2023_v28 }
 0x8b2   : > { %3452 = vmatpush3.bf16.msra.mxu0 %v2129_v29  ;;  %3453 = vmatprep.mubr.msk.bf16.mxu0 %vm3995_vm1, %v3994_v58 }
 0x8b3   : > { %3549 = vmatprep.subr.msk.bf16.mxu0 %vm1031_vm3, %v773_v3 }
 0x8e4   : > { %v1987_v30 = vpop.xlane.xlu0 %1986 }
 0x8e5   : > { %v1993_v31 = vsub.f32 %v1923_v13, %v1987_v30 }
 0x8e7   : > { %v1999_v32 = vmul.f32 1.442695, %v1993_v31 }
 0x8e8   : > { %v1990_v33 = vpop.xlane.xlu0 %1989 }
 0x8e9   : > { %3719 = vpow2.f32 %v1999_v32  ;;  %v1994_v34 = vsub.f32 %v1973_v50, %v1990_v33 }
 0x8eb   : > { %v2001_v35 = vmul.f32 1.442695, %v1994_v34 }
 0x8ec   : > { %v2008_v40 = vpop.xlane.xlu0 %2007 }
 0x8ed   : > { %3721 = vpow2.f32 %v2001_v35 }
 0x8ee   : > { %3723 = vrcp.f32 %v2008_v40 }
 0x8f3   : > { %v3720_v36 = vpop.eup %3719 }
 0x8f4   : > { %v2009_v37 = vsel %vm787_vm2, %v3720_v36, 0.0 }
 0x8f5   : > { %2010 = vadd.xlane.f32.xlu1 %v2009_v37 }
 0x8f7   : > { %v3722_v38 = vpop.eup %3721 }
 0x8f8   : > { %v2012_v39 = vsel %vm787_vm2, %v3722_v38, 0.0  ;;  %v3724_v48 = vpop.eup %3723 }
 0x8f9   : > { %2013 = vadd.xlane.f32.xlu0 %v2012_v39  ;;  %v2020_v52 = vmul.f32 %v3724_v48, %v3716_v20 }
 0x8fb   : > { %v2024_v42 = vpack.c.bf16 %v2020_v52, %v2020_v52 }
 0x906   : > { %2171 = vrot.lane.b32.xlu1 %v4386_v11, %s4003_s30 }
 0x90a   : > { %2335 = vrot.lane.b32.xlu1 %v4388_v12, %s4004_s19 }
 0x90e   : > { %2333 = vrot.lane.b32.xlu1 %v4388_v12, %s4005_s28 }
 0x90f   : > { %2075 = vrot.lane.b32.xlu0 %v4388_v12, %s4003_s30  ;;  %s2974_s30 = sshll.u32 %s453_s8, 4  ;;  %s4715_s30 = int_to_ptr.vmem [resolvable:$true] %s2974_s30 }
 0x910   : > { %p3896_p13 = scmp.lt.s32.totalorder %s4715_s30, %s3894_s12 }
 0x912   : > { %2435 = vrot.lane.b32.xlu1 %v4386_v11, %s4004_s19 }
 0x913   : > { %2285 = vrot.lane.b32.xlu0 %v4382_v8, %s4004_s19 }
 0x916   : > { %2433 = vrot.lane.b32.xlu1 %v4386_v11, %s4005_s28 }
 0x917   : > { %2283 = vrot.lane.b32.xlu0 %v4382_v8, %s4005_s28 }
 0x91b   : > { %2385 = vrot.lane.b32.xlu0 %v4380_v6, %s4004_s19 }
 0x91f   : > { %2383 = vrot.lane.b32.xlu0 %v4380_v6, %s4005_s28 }
 0x982   : > { %v2011_v43 = vpop.xlane.xlu1 %2010 }
 0x983   : > { %3725 = vrcp.f32 %v2011_v43 }
 0x984   : > { %v2069_v45 = vpop.f32.mrb[40].mxu0 }
 0x985   : > { %v3443_v46 = vpop.f32.mrb[41].mxu0 }
 0x986   : > { %v2072_v47 = vpop.f32.mrb[42].mxu0  ;;  %v2014_v49 = vpop.xlane.xlu0 %2013 }
 0x987   : > { %v3444_v51 = vpop.f32.mrb[43].mxu0  ;;  %3727 = vrcp.f32 %v2014_v49  ;;  %v2172_v56 = vpop.permute.xlu1 %2171 }
 0x988   : > { %v2177_v44 = vsel %vm1031_vm3, %v2172_v56, 0 }
 0x98a   : > { %v2076_v53 = vpop.permute.xlu0 %2075 }
 0x98b   : > { %v2081_v54 = vsel %vm1031_vm3, %v2076_v53, 0  ;;  %v2336_v18 = vpop.permute.xlu1 %2335 }
 0x98c   : > { %3446 = vmatpush3.bf16.msra.mxu1 %v2081_v54  ;;  %v2341_v26 = vsel %vm787_vm2, %v2336_v18, 0 }
 0x98d   : > { %v3726_v55 = vpop.eup %3725  ;;  %3457 = vmatprep.subr.bf16.mxu1 %v3994_v58 }
 0x98e   : > { %v2021_v41 = vmul.f32 %v3726_v55, %v3720_v36  ;;  %v2286_v62 = vpop.permute.xlu0 %2285 }
 0x98f   : > { %3448 = vmatmul.mubr.msk.bf16.vlgmr.msra.gmra.mrb[48].mxu1 %vm787_vm2, %v2024_v42  ;;  %v2291_v63 = vsel %vm787_vm2, %v2286_v62, 0  ;;  %v2334_v24 = vpop.permute.xlu1 %2333 }
 0x990   : > { %v2025_v57 = vpack.c.bf16 %v2021_v41, %v2021_v41  ;;  %3458 = vmatpush3.bf16.msra.mxu1 %v2177_v44  ;;  %3459 = vmatprep.mubr.msk.bf16.mxu1 %vm3995_vm1, %v3994_v58 }
 0x991   : > { %v3728_v60 = vpop.eup %3727  ;;  %3469 = vmatprep.subr.bf16.mxu1 %v3994_v58 }
 0x992   : > { %3454 = vmatmul.mubr.msk.bf16.vlgmr.msra.gmra.mrb[44].mxu0 %vm787_vm2, %v2025_v57  ;;  %v2022_v50 = vmul.f32 %v3728_v60, %v3722_v38  ;;  %v2284_v61 = vpop.permute.xlu0 %2283 }
 0x993   : > { %3464 = vmatpush3.bf16.msra.mxu0 %v2228_v4  ;;  %v2436_v28 = vpop.permute.xlu1 %2435 }
 0x994   : > { %v2026_v59 = vpack.c.bf16 %v2022_v50, %v2022_v50  ;;  %3475 = vmatprep.subr.bf16.mxu0 %v3994_v58  ;;  %v2441_v32 = vsel %vm787_vm2, %v2436_v28, 0 }
 0x996   : > { %v2386_v0 = vpop.permute.xlu0 %2385 }
 0x997   : > { %3460 = vmatmul.mubr.msk.bf16.vlgmr.msra.gmra.mrb[52].mxu1 %vm787_vm2, %v2026_v59  ;;  %v2391_v1 = vsel %vm787_vm2, %v2386_v0, 0  ;;  %v2434_v36 = vpop.permute.xlu1 %2433 }
 0x998   : > { %3471 = vmatprep.mubr.msk.bf16.mxu1 %vm3995_vm1, %v3994_v58 }
 0x999   : > { %3470 = vmatpush3.bf16.xpose.msra.mxu1 %v2291_v63 }
 0x99a   : > { %3481 = vmatprep.subr.bf16.mxu1 %v3994_v58  ;;  %v2384_v2 = vpop.permute.xlu0 %2383 }
 0x9a0   : > { %3472 = vmatmul.mubr.msk.bf16.vlgmr.msra.gmra.mrb[56].mxu1 %vm787_vm2, %v2284_v61 }
 0x9a1   : > { %3482 = vmatpush3.bf16.xpose.msra.mxu1 %v2391_v1  ;;  %3483 = vmatprep.mubr.msk.bf16.mxu1 %vm3995_vm1, %v3994_v58 }
 0x9a2   : > { %3493 = vmatprep.subr.bf16.mxu1 %v3994_v58 }
 0x9a8   : > { %3484 = vmatmul.mubr.msk.bf16.vlgmr.msra.gmra.mrb[60].mxu1 %vm787_vm2, %v2384_v2 }
 0x9a9   : > { %3495 = vmatprep.mubr.msk.bf16.mxu1 %vm3995_vm1, %v3994_v58 }
 0xa62   : > { %v2117_v5 = vpop.f32.mrb[48].mxu1 }
 0xa63   : > { %v2219_v7 = vpack.c.bf16 %v2117_v5, %v2069_v45  ;;  %v3449_v10 = vpop.f32.mrb[49].mxu1 }
 0xa64   : > { %v2120_v13 = vpop.f32.mrb[50].mxu1 }
 0xa65   : > { %v2165_v14 = vpop.f32.mrb[44].mxu0  ;;  %v3450_v15 = vpop.f32.mrb[51].mxu1  ;;  %3465 = vmatprep.mubr.msk.bf16.mxu0 %vm787_vm2, %v2219_v7 }
 0xa66   : > { %v3455_v16 = vpop.f32.mrb[45].mxu0 }
 0xa67   : > { %v2168_v19 = vpop.f32.mrb[46].mxu0 }
 0xa68   : > { %v3456_v20 = vpop.f32.mrb[47].mxu0 }
 0xa6a   : > { %v2213_v21 = vpop.f32.mrb[52].mxu1 }
 0xa6b   : > { %v2220_v22 = vpack.c.bf16 %v2213_v21, %v2165_v14  ;;  %v3461_v23 = vpop.f32.mrb[53].mxu1 }
 0xa6c   : > { %v2216_v25 = vpop.f32.mrb[54].mxu1 }
 0xa6d   : > { %v3462_v27 = vpop.f32.mrb[55].mxu1  ;;  %3466 = vmatmul.mubr.msk.bf16.vlgmr.msra.gmra.mrb[32].mxu0 %vm787_vm2, %v2220_v22 }
 0xa6e   : > { %3476 = vmatpush3.bf16.xpose.msra.mxu0 %v2341_v26  ;;  %3477 = vmatprep.mubr.msk.bf16.mxu0 %vm3995_vm1, %v3994_v58 }
 0xa6f   : > { %3487 = vmatprep.subr.bf16.mxu0 %v3994_v58 }
 0xa73   : > { %v2327_v29 = vpop.f32.mrb[56].mxu1 }
 0xa74   : > { %v3473_v30 = vpop.f32.mrb[57].mxu1  ;;  %v2483_v31 = vsel %vm787_vm2, %v2327_v29, -inf }
 0xa75   : > { %3478 = vmatmul.mubr.msk.bf16.vlgmr.msra.gmra.mrb[48].mxu0 %vm787_vm2, %v2334_v24  ;;  %2484 = vmax.xlane.f32.xlu0 %v2483_v31  ;;  %v2330_v33 = vpop.f32.mrb[58].mxu1 }
 0xa76   : > { %3488 = vmatpush3.bf16.xpose.msra.mxu0 %v2441_v32  ;;  %v3474_v34 = vpop.f32.mrb[59].mxu1  ;;  %3489 = vmatprep.mubr.msk.bf16.mxu0 %vm3995_vm1, %v3994_v58 }
 0xa77   : > { %3499 = vmatprep.subr.bf16.mxu0 %v3994_v58 }
 0xa7b   : > { %v2427_v35 = vpop.f32.mrb[60].mxu1 }
 0xa7c   : > { %v3485_v37 = vpop.f32.mrb[61].mxu1  ;;  %v2489_v38 = vsel %vm787_vm2, %v2427_v35, -inf }
 0xa7d   : > { %3490 = vmatmul.mubr.msk.bf16.vlgmr.msra.gmra.mrb[52].mxu0 %vm787_vm2, %v2434_v36  ;;  %2490 = vmax.xlane.f32.xlu0 %v2489_v38  ;;  %v2430_v39 = vpop.f32.mrb[62].mxu1 }
 0xa7e   : > { %v3486_v40 = vpop.f32.mrb[63].mxu1  ;;  %3501 = vmatprep.mubr.msk.bf16.mxu0 %vm3995_vm1, %v3994_v58 }
 0xb02   : > { %v2485_v43 = vpop.xlane.xlu0 %2484 }
 0xb03   : > { %v2495_v45 = vsub.f32 %v2327_v29, %v2485_v43 }
 0xb05   : > { %v2499_v47 = vmul.f32 1.442695, %v2495_v45  ;;  %v774_v45 = vld [vmem:[%s4775_s5 + $0xc] sm:$0xf] }
 0xb07   : > { %3729 = vpow2.f32 %v2499_v47 }
 0xb0a   : > { %v2491_v46 = vpop.xlane.xlu0 %2490 }
 0xb0b   : > { %v2497_v48 = vsub.f32 %v2427_v35, %v2491_v46  ;;  %v2732_v46 = vsel %vm1031_vm3, %v774_v45, 0 }
 0xb0d   : > { %v2503_v49 = vmul.f32 1.442695, %v2497_v48 }
 0xb0f   : > { %3731 = vpow2.f32 %v2503_v49 }
 0xb11   : > { %v3730_v54 = vpop.eup %3729 }
 0xb12   : > { %v2507_v41 = vsel %vm787_vm2, %v3730_v54, 0.0 }
 0xb19   : > { %v3732_v42 = vpop.eup %3731 }
 0xb1a   : > { %v2513_v62 = vsel %vm787_vm2, %v3732_v42, 0.0 }
 0xb48   : > { %v2377_v51 = vpop.f32.mrb[48].mxu0 }
 0xb49   : > { %v3479_v52 = vpop.f32.mrb[49].mxu0  ;;  %v2486_v53 = vsel %vm787_vm2, %v2377_v51, -inf }
 0xb4a   : > { %2487 = vmax.xlane.f32.xlu1 %v2486_v53  ;;  %v2380_v55 = vpop.f32.mrb[50].mxu0 }
 0xb4b   : > { %v3480_v56 = vpop.f32.mrb[51].mxu0 }
 0xb4e   : > { %2508 = vadd.xlane.f32.xlu1 %v2507_v41 }
 0xb50   : > { %v2477_v44 = vpop.f32.mrb[52].mxu0 }
 0xb51   : > { %v3491_v57 = vpop.f32.mrb[53].mxu0  ;;  %v2492_v60 = vsel %vm787_vm2, %v2477_v44, -inf }
 0xb52   : > { %v2480_v50 = vpop.f32.mrb[54].mxu0  ;;  %2493 = vmax.xlane.f32.xlu0 %v2492_v60  ;;  %2514 = vadd.xlane.f32.xlu1 %v2513_v62  ;;  %v3185_v57 = vld [vmem:[%s4776_s6] ss:$0 sm:$0xff] }
 0xb53   : > { %v3492_v59 = vpop.f32.mrb[55].mxu0 }
 0xb63   : > { %2531 = vrot.lane.b32.xlu1 %v4382_v8, %s4006_s17 }
 0xb67   : > { %2627 = vrot.lane.b32.xlu1 %v4380_v6, %s4006_s17 }
 0xb6b   : > { %2675 = vrot.lane.b32.xlu1 %v4386_v11, %s4006_s17 }
 0xbd7   : > { %v2488_v61 = vpop.xlane.xlu1 %2487 }
 0xbd8   : > { %v2496_v63 = vsub.f32 %v2377_v51, %v2488_v61 }
 0xbda   : > { %v2501_v0 = vmul.f32 1.442695, %v2496_v63 }
 0xbdb   : > { %v2509_v1 = vpop.xlane.xlu1 %2508 }
 0xbdc   : > { %3733 = vpow2.f32 %v2501_v0 }
 0xbdd   : > { %3735 = vrcp.f32 %v2509_v1 }
 0xbdf   : > { %v2515_v2 = vpop.xlane.xlu1 %2514  ;;  %v2494_v3 = vpop.xlane.xlu0 %2493 }
 0xbe0   : > { %v2498_v4 = vsub.f32 %v2477_v44, %v2494_v3  ;;  %3737 = vrcp.f32 %v2515_v2  ;;  %v3680_v44 = vld [vmem:[#allocation10 + $0x8] sm:$0xff]  }
 0xbe2   : > { %v2505_v5 = vmul.f32 1.442695, %v2498_v4 }
 0xbe3   : > { %v2532_v7 = vpop.permute.xlu1 %2531 }
 0xbe4   : > { %3739 = vpow2.f32 %v2505_v5  ;;  %v2537_v8 = vsel %vm1031_vm3, %v2532_v7, 0 }
 0xbe5   : > { %3494 = vmatpush3.bf16.msra.mxu1 %v2537_v8 }
 0xbe6   : > { %v3734_v6 = vpop.eup %3733  ;;  %3505 = vmatprep.subr.bf16.mxu1 %v3994_v58 }
 0xbe7   : > { %v3736_v11 = vpop.eup %3735  ;;  %v2510_v10 = vsel %vm787_vm2, %v3734_v6, 0.0  ;;  %v2628_v14 = vpop.permute.xlu1 %2627 }
 0xbe8   : > { %v2523_v13 = vmul.f32 %v3736_v11, %v3730_v54  ;;  %2511 = vadd.xlane.f32.xlu0 %v2510_v10  ;;  %v2633_v18 = vsel %vm1031_vm3, %v2628_v14, 0 }
 0xbea   : > { %v2527_v15 = vpack.c.bf16 %v2523_v13, %v2523_v13  ;;  %v3738_v16 = vpop.eup %3737 }
 0xbeb   : > { %v2525_v20 = vmul.f32 %v3738_v16, %v3732_v42  ;;  %v2676_v29 = vpop.permute.xlu1 %2675  ;;  %v3679_v42 = vld [vmem:[#allocation10] sm:$0xff]  }
 0xbec   : > { %3496 = vmatmul.mubr.msk.bf16.vlgmr.msra.gmra.mrb[64].mxu1 %vm787_vm2, %v2527_v15  ;;  %v2681_v31 = vsel %vm1031_vm3, %v2676_v29, 0 }
 0xbed   : > { %3506 = vmatpush3.bf16.msra.mxu1 %v2633_v18  ;;  %3507 = vmatprep.mubr.msk.bf16.mxu1 %vm3995_vm1, %v3994_v58  ;;  %v2529_v22 = vpack.c.bf16 %v2525_v20, %v2525_v20 }
 0xbee   : > { %v3740_v19 = vpop.eup %3739  ;;  %3523 = vmatprep.subr.bf16.mxu1 %v3679_v42 }
 0xbef   : > { %v2516_v21 = vsel %vm787_vm2, %v3740_v19, 0.0 }
 0xbf0   : > { %2517 = vadd.xlane.f32.xlu0 %v2516_v21 }
 0xbf4   : > { %3508 = vmatmul.mubr.msk.bf16.vlgmr.msra.gmra.mrb[68].mxu1 %vm787_vm2, %v2529_v22 }
 0xbf5   : > { %3524 = vmatpush3.bf16.msra.mxu1 %v3679_v42 }
 0xbf6   : > { %3525 = vmatprep.subr.bf16.mxu1 %v3680_v44 }
 0xbf9   : > { %3526 = vmatpush3.bf16.msra.mxu1 %v3680_v44 }
 0xc06   : > { %2579 = vrot.lane.b32.xlu0 %v4388_v12, %s4006_s17  ;;  %s3889_s17 = scalar_lea.vmem %s4715_s30, 512 }
 0xc07   : > { %p3890_p4 = scmp.ne.s32.totalorder %s4715_s30, %s3889_s17  ;;  %p3897_p3 = scmp.lt.s32.totalorder %s3895_s2, %s3889_s17 }
 0xc09   : > { %p3891_p8 = pnand %p3890_p4, %p4215_p10  ;;  %p3898_p5 = por %p3897_p3, %p3896_p13 }
 0xc0b   : > { %p3892_p1 = pneg %p3891_p8 }
 0xc0d   : > { %p3899_p7 = pnand %p3898_p5, %p3892_p1 }
 0xc75   : > { %v2512_v23 = vpop.xlane.xlu0 %2511 }
 0xc76   : > { %3741 = vrcp.f32 %v2512_v23 }
 0xc7d   : > { %v2518_v24 = vpop.xlane.xlu0 %2517 }
 0xc7e   : > { %3743 = vrcp.f32 %v2518_v24 }
 0xc80   : > { %v3742_v25 = vpop.eup %3741 }
 0xc81   : > { %v2524_v26 = vmul.f32 %v3742_v25, %v3734_v6  ;;  %v2580_v27 = vpop.permute.xlu0 %2579  ;;  %v3186_v6 = vld [vmem:[%s4817_s27] ss:$0 sm:$0xff] }
 0xc82   : > { %v2585_v28 = vsel %vm1031_vm3, %v2580_v27, 0 }
 0xc83   : > { %3500 = vmatpush3.bf16.msra.mxu0 %v2585_v28  ;;  %v2528_v30 = vpack.c.bf16 %v2524_v26, %v2524_v26 }
 0xc84   : > { %3511 = vmatprep.subr.bf16.mxu0 %v3994_v58 }
 0xc86   : > { %3502 = vmatmul.mubr.msk.bf16.vlgmr.msra.gmra.mrb[56].mxu0 %vm787_vm2, %v2528_v30 }
 0xc87   : > { %3512 = vmatpush3.bf16.msra.mxu0 %v2681_v31  ;;  %3513 = vmatprep.mubr.msk.bf16.mxu0 %vm3995_vm1, %v3994_v58 }
 0xc88   : > { %v3744_v12 = vpop.eup %3743  ;;  %3550 = vmatprep.subr.msk.bf16.mxu0 %vm1031_vm3, %v774_v45 }
 0xc89   : > { %v2526_v32 = vmul.f32 %v3744_v12, %v3740_v19 }
 0xc8b   : > { %v2530_v33 = vpack.c.bf16 %v2526_v32, %v2526_v32 }
 0xc8e   : > { %3514 = vmatmul.mubr.msk.bf16.vlgmr.msra.gmra.mrb[60].mxu0 %vm787_vm2, %v2530_v33 }
 0xc8f   : > { %3518 = vmatpush3.bf16.msra.mxu0 %v2732_v46 }
 0xcbf   : > { %v2573_v34 = vpop.f32.mrb[64].mxu1 }
 0xcc0   : > { %v3497_v35 = vpop.f32.mrb[65].mxu1 }
 0xcc1   : > { %v2576_v36 = vpop.f32.mrb[66].mxu1 }
 0xcc2   : > { %v3498_v37 = vpop.f32.mrb[67].mxu1 }
 0xcc7   : > { %v2669_v38 = vpop.f32.mrb[68].mxu1 }
 0xcc8   : > { %v3509_v39 = vpop.f32.mrb[69].mxu1 }
 0xcc9   : > { %v2672_v40 = vpop.f32.mrb[70].mxu1 }
 0xcca   : > { %v3510_v43 = vpop.f32.mrb[71].mxu1 }
 0xd59   : > { %v2621_v47 = vpop.f32.mrb[56].mxu0 }
 0xd5a   : > { %v2723_v48 = vpack.c.bf16 %v2621_v47, %v2573_v34  ;;  %v3503_v49 = vpop.f32.mrb[57].mxu0 }
 0xd5b   : > { %v2624_v51 = vpop.f32.mrb[58].mxu0 }
 0xd5c   : > { %v3504_v52 = vpop.f32.mrb[59].mxu0  ;;  %3519 = vmatprep.mubr.msk.bf16.mxu0 %vm787_vm2, %v2723_v48 }
 0xd61   : > { %v2717_v53 = vpop.f32.mrb[60].mxu0 }
 0xd62   : > { %v2724_v54 = vpack.c.bf16 %v2717_v53, %v2669_v38  ;;  %v3515_v55 = vpop.f32.mrb[61].mxu0 }
 0xd63   : > { %v2720_v56 = vpop.f32.mrb[62].mxu0 }
 0xd64   : > { %v3516_v41 = vpop.f32.mrb[63].mxu0  ;;  %3520 = vmatmul.mubr.msk.bf16.vlgmr.msra.gmra.mrb[32].mxu0 %vm787_vm2, %v2724_v54 }
 0xe37   : > { %v3521_v60 = vpop.f32.mrb[32].mxu0 }
 0xe38   : > { %v2796_v62 = vadd.f32 %v3521_v60, %v3185_v57  ;;  %v2768_v50 = vpop.f32.mrb[33].mxu0 }
 0xe39   : > { %v2794_v59 = vadd.f32 %v3185_v57, %v2768_v50  ;;  %v3522_v61 = vpop.f32.mrb[34].mxu0 }
 0xe3a   : > { %v2797_v63 = vadd.f32 %v3522_v61, %v3185_v57  ;;  %v2771_v0 = vpop.f32.mrb[35].mxu0  ;;  %v2800_v2 = vmax.f32 %v2796_v62, 0.0 }
 0xe3b   : > { %v2795_v1 = vadd.f32 %v3185_v57, %v2771_v0  ;;  %v2798_v4 = vmax.f32 %v2794_v59, 0.0 }
 0xe3c   : > { %v2801_v3 = vmax.f32 %v2797_v63, 0.0 }
 0xe3d   : > { %v2799_v5 = vmax.f32 %v2795_v1, 0.0 }
 0xe3e   : > { %v2803_v7 = vpack.c.bf16 %v2801_v3, %v2800_v2 }
 0xe3f   : > { %v2802_v8 = vpack.c.bf16 %v2799_v5, %v2798_v4 }
 0xe41   : > { %3527 = vmatprep.mubr.msk.bf16.mxu1 %vm631_vm0, %v2802_v8 }
 0xe42   : > { %3528 = vmatmul.mubr.msk.bf16.vlgmr.msra.gmra.mrb[72].mxu1 %vm631_vm0, %v2803_v7 }
 0xf15   : > { %v3529_v11 = vpop.f32.mrb[72].mxu1 }
 0xf16   : > { %v2876_v10 = vadd.f32 %v3529_v11, %v3186_v6  ;;  %v2867_v13 = vpop.f32.mrb[73].mxu1 }
 0xf17   : > { %v2868_v14 = vadd.f32 %v3186_v6, %v2867_v13  ;;  %v3530_v15 = vpop.f32.mrb[74].mxu1 }
 0xf18   : > { %v2879_v16 = vadd.f32 %v3530_v15, %v3186_v6  ;;  %v2870_v18 = vpop.f32.mrb[75].mxu1 }
 0xf19   : > { %v2882_v19 = vcombine.low %v2868_v14, %v2876_v10  ;;  %v2883_v20 = vcombine.high %v2868_v14, %v2876_v10  ;;  %v2871_v21 = vadd.f32 %v3186_v6, %v2870_v18 }
 0xf1b   : > { %v2898_v22 = vcombine.low %v2871_v21, %v2879_v16  ;;  %v2899_v23 = vcombine.high %v2871_v21, %v2879_v16  ;;  %v2890_v24 = vrot.slane %v2882_v19, %v4343_v9  ;;  %v2897_v25 = vrot.slane %v2883_v20, %v4343_v9 }
 0xf1d   : > { %v2906_v26 = vrot.slane %v2898_v22, %v4343_v9  ;;  %v2913_v27 = vrot.slane %v2899_v23, %v4343_v9 }
 0xf1f   : > { %v2914_v28 = vcombine.low %v2890_v24, %v2906_v26  ;;  %v2915_v29 = vcombine.high %v2890_v24, %v2906_v26  ;;  %v2930_v30 = vcombine.low %v2897_v25, %v2913_v27  ;;  %v2931_v31 = vcombine.high %v2897_v25, %v2913_v27 }
 0xf21   : > { %v2922_v12 = vrot.slane %v2914_v28, %v4346_v17  ;;  %v2929_v32 = vrot.slane %v2915_v29, %v4346_v17  ;;  %v2938_v33 = vrot.slane %v2930_v30, %v4346_v17  ;;  %v2945_v34 = vrot.slane %v2931_v31, %v4346_v17 }
 0xf23   : > { %v2946_v9 = vcombine.high %v2922_v12, %v3994_v58  ;;  %v2947_v35 = vcombine.high %v2929_v32, %v3994_v58  ;;  %v2948_v36 = vcombine.high %v2938_v33, %v3994_v58  ;;  %v2949_v37 = vcombine.high %v2945_v34, %v3994_v58  ;;  %2951 = vst.msk [vmem:[%s453_s8] sm:$0xf] %vm2950_vm4, %v2922_v12 }
 0xf24   : > { %2953 = vst.msk [vmem:[%s453_s8 + $0x8] sm:$0xf] %vm2950_vm4, %v2929_v32  ;;  %2955 = vst.msk [vmem:[%s453_s8 + $0x10] sm:$0xf] %vm2950_vm4, %v2938_v33 }
 0xf25   : > { %2957 = vst.msk [vmem:[%s453_s8 + $0x18] sm:$0xf] %vm2950_vm4, %v2945_v34  ;;  %2952 = vst.msk [vmem:[%s453_s8 + $0x4] sm:$0xf] %vm2950_vm4, %v2946_v9 }
 0xf26   : > { %2954 = vst.msk [vmem:[%s453_s8 + $0xc] sm:$0xf] %vm2950_vm4, %v2947_v35  ;;  %2956 = vst.msk [vmem:[%s453_s8 + $0x14] sm:$0xf] %vm2950_vm4, %v2948_v36 }
 0xf27   : > { %2958 = vst.msk [vmem:[%s453_s8 + $0x1c] sm:$0xf] %vm2950_vm4, %v2949_v37 }
 0xf28   : > { %3902 = shalt.err (!%p3899_p7)
}
 0xf29   : > { %s3903_s3 = scalar_lea.hbm %s4705_s15, 512  ;;  %s3907_s27 = scalar_lea.hbm %s4819_s23, 1024 }
 0xf2a   : > { %p3904_p12 = scmp.ne.s32.totalorder %s4705_s15, %s3903_s3  ;;  %p3908_p9 = scmp.lt.u32.totalorder %s4705_s15, %s4819_s23 }
 0xf2b   : > { %p3909_p0 = scmp.lt.u32.totalorder %s3907_s27, %s3903_s3  ;;  %p3911_p4 = scmp.lt.u32.totalorder %s3903_s3, %s4705_s15 }
 0xf2c   : > { %p3905_p6 = pnand %p3904_p12, %p4215_p10 }
 0xf2d   : > { %p3910_p2 = por %p3909_p0, %p3908_p9 }
 0xf2e   : > { %p3906_p11 = pneg %p3905_p6 }
 0xf2f   : > { %p3912_p8 = por %p3911_p4, %p3910_p2 }
 0xf31   : > { %p3913_p1 = pnand %p3912_p8, %p3906_p11 }
 0xf33   : > { %3916 = shalt.err (!%p3913_p1)
}
 0xf34   : > { %s4008_s8 = smov 4  }
 0xf35   : > { %3567 = dma.vmem_to_hbm [thread:$0]  (%p4215_p10), %s4715_s30, 512, %s4705_s15, %s2960_s16, %s3997_s21, %s3997_s21, %s4008_s8  }
 0xf36 PF: > { %s4820_s19 = sld [smem:[#allocation17_spill]]  ;;  %s4821_s28 = sld [smem:[#allocation19_spill]] }
 0xf37   : > { %p4823_p3 = scmp.ge.s32.totalorder %s3983_s14, 2 }
 0xf3c   : > { %s2989_s17 = sand.u32 1, %s4820_s19   ;;  %p4822_p13 = scmp.ne.s32.totalorder %s4821_s28, 0 }
 0xf3d   : > { %s2990_s25 = scalar_lea.sflag [#allocation4], %s2989_s17 }
 0xf3e   : > { %p3587_p5 = pnand %p4823_p3, %p4822_p13 }
 0xf40   : > { %3958 = dma.done.wait (!%p3587_p5), %s2990_s25, 512  }
 0xf41   : > { %3960 = vsyncadd (!%p3587_p5), %s2990_s25, 4294966784  ;;  %s29_s14 = sadd.s32 1, %s3983_s14   ;;  %s4824_s30 = smov %s3967_s10 }
 0xf42   : > { %p26_p7 = scmp.ge.s32.totalorder %s29_s14, 4   ;;  %s4825_s10 = smov %s3971_s11 }
 0xf43   : > { %s4826_s11 = smov %s4227_s20  ;;  %s4827_s12 = smov %s3979_s13 }
 0xf44   : > { %s4828_s13 = smov %s4830_s22  ;;  %28 = sbr.rel (!%p26_p7) target bundleno = 15 (0xf), region = 126 }
 0xf4b   :  { %2995 = vsyncpa [#allocation3], 1 }
 0xf4c   :  { %2997 = vsyncpa [#allocation3 + $0x1], 1 }
 0xf4d   :  { %2998 = vsyncpa [#allocation6], 1 }
 0xf4e   :  { %3000 = vsyncpa [#allocation6 + $0x1], 1 }
 0xf4f   :  { %3001 = vsyncpa [#allocation9], 1 }
 0xf50   :  { %3002 = vsyncpa [#allocation4], 1 }
 0xf51   :  { %3004 = vsyncpa [#allocation4 + $0x1], 1 }

</bundles_post_ra>
